<compile_context>
chip_gen: v5e
topology: v5e:2x2
jax: 0.10.0
libtpu: 0.0.40
codegen_flags: <defaults>
</compile_context>

<pallas_src>
import functools

import jax
import jax.numpy as jnp
from jax import lax
from jax.experimental import pallas as pl
from jax.experimental.pallas import tpu as pltpu


# Matmul input dtype.  f32 keeps bit-parity with the PyTorch module (and the
# tight allclose check below).  Set to jnp.bfloat16 on v6e/v7x for MXU peak:
# weights/x are cast wrapper-side, accumulation stays f32.
MATMUL_DTYPE = jnp.float32


def _round_up(x, m):
    return ((x + m - 1) // m) * m


# -----------------------------------------------------------------------------
# Fused kernel: all RNN layers + final linear.
# Ref order: x, (w_ih_t, w_hh_t, b) * n_layers, fc_w_t, fc_b, out, act, h_carry
# -----------------------------------------------------------------------------
def _make_fused_rnn_kernel(n_layers, seq_len, t_chunk, n_t_chunks, bc,
                           hidden_p, steps_per, time_padded):
    n_full = t_chunk // steps_per
    rem = t_chunk % steps_per
    unroll = max(1, min(8, t_chunk))

    def kernel(*refs):
        x_ref = refs[0]                                  # (t_chunk, bc, Ep)
        layer_refs = refs[1:1 + 3 * n_layers]
        fc_w_ref = refs[1 + 3 * n_layers]                # (Hp, Op)
        fc_b_ref = refs[2 + 3 * n_layers]                # (1, Op)
        out_ref = refs[3 + 3 * n_layers]                 # (bc, Op)
        act_ref = refs[4 + 3 * n_layers]                 # VMEM (t_chunk, bc, Hp)
        h_ref = refs[5 + 3 * n_layers]                   # VMEM (n_layers, bc, Hp)

        tci = pl.program_id(1)                           # time-chunk index

        @pl.when(tci == 0)
        def _init():
            h_ref[...] = jnp.zeros_like(h_ref)

        for l in range(n_layers):
            w_ih = layer_refs[3 * l][...]                # (in_p, Hp)
            w_hh = layer_refs[3 * l + 1][...]            # (Hp, Hp)
            bias = layer_refs[3 * l + 2][...]            # (1, Hp) f32
            last_layer = l == n_layers - 1
            in_ref = x_ref if l == 0 else act_ref
            in_dim = in_ref.shape[-1]

            # (1) Hoisted input projection, in bounded row chunks.  For l > 0
            #     this is in place on act_ref: each row depends only on itself,
            #     so per-chunk read-then-overwrite is safe and never
            #     materializes the whole chunk as one SSA value.
            def _project(start, size):
                sl = pl.ds(start, size)
                v = in_ref[sl].reshape(size * bc, in_dim)
                proj = jnp.dot(v.astype(MATMUL_DTYPE), w_ih,
                               preferred_element_type=jnp.float32) + bias
                act_ref[sl] = proj.reshape(size, bc, hidden_p)

            for c in range(n_full):
                _project(c * steps_per, steps_per)
            if rem:
                _project(n_full * steps_per, rem)

            # (2) Serial recurrence: only the unavoidable h @ W_hh per step.
            #     h is carried in VMEM scratch so it persists across time
            #     chunks of the grid.
            # TODO(synk): hold W_hh stationary in the MXU via
            # pltpu.matmul_push_rhs / matmul_acc_lhs to avoid re-streaming the
            # (Hp, Hp) weights every step.
            def step(ti, carry, _l=l, _w_hh=w_hh, _last=last_layer):
                h_prev = h_ref[_l]
                xp = act_ref[ti]
                h_new = jnp.tanh(xp + jnp.dot(
                    h_prev.astype(MATMUL_DTYPE), _w_hh,
                    preferred_element_type=jnp.float32))
                if time_padded:
                    valid = (tci * t_chunk + ti) < seq_len
                    h_new = jnp.where(valid, h_new, h_prev)
                h_ref[_l] = h_new
                if not _last:
                    act_ref[ti] = h_new                  # next layer's input
                return carry

            lax.fori_loop(0, t_chunk, step, 0, unroll=unroll)

        # (3) Final linear fused in (dropout = identity, eval); written once
        #     on the last time chunk.
        @pl.when(tci == n_t_chunks - 1)
        def _finish():
            out_ref[...] = (
                jnp.dot(h_ref[n_layers - 1].astype(MATMUL_DTYPE), fc_w_ref[...],
                        preferred_element_type=jnp.float32)
                + fc_b_ref[...]).astype(out_ref.dtype)

    return kernel


def fused_rnn_call(x, layer_weights, fc_w_t, fc_b, *, num_batch_chunks=1):
    """x: (T, Bp, Ep); layer_weights: [(w_ih_t, w_hh_t, b)]; returns (Bp, Op)."""
    seq_len, b_pad, e_p = x.shape
    n_layers = len(layer_weights)
    hidden_p = layer_weights[0][1].shape[0]
    out_p = fc_w_t.shape[1]

    nb = num_batch_chunks
    assert b_pad % nb == 0, "b_pad must divide evenly into batch chunks"
    bc = b_pad // nb
    assert bc % 8 == 0, "batch chunk must be a sublane multiple"

    itemsize = jnp.dtype(MATMUL_DTYPE).itemsize

    # Projection sub-chunk: ~256 sublanes of rows per matmul.
    steps_per = max(1, min(max(1, 256 // bc), seq_len))

    # Time-chunk size bounded by a VMEM byte budget (~2 MiB activation chunk).
    chunk_budget = 2 * 1024 * 1024
    max_steps = max(8, chunk_budget // (bc * max(e_p, hidden_p) * 4))
    t_chunk = max(1, min(seq_len, max_steps))
    n_t_chunks = -(-seq_len // t_chunk)
    t_total = n_t_chunks * t_chunk
    time_padded = t_total != seq_len
    if time_padded:
        # Padded trailing steps are masked inside the kernel (h is frozen).
        x = jnp.pad(x, ((0, t_total - seq_len), (0, 0), (0, 0)))

    # --- specs -------------------------------------------------------------
    flat = [x]
    in_specs = [pl.BlockSpec((t_chunk, bc, e_p), lambda b, t: (t, b, 0))]
    for (w_ih_t, w_hh_t, b) in layer_weights:
        for w in (w_ih_t, w_hh_t, b):
            flat.append(w)
            in_specs.append(pl.BlockSpec(w.shape, lambda bi, ti: (0, 0)))
    flat += [fc_w_t, fc_b]
    in_specs += [pl.BlockSpec(fc_w_t.shape, lambda bi, ti: (0, 0)),
                 pl.BlockSpec(fc_b.shape, lambda bi, ti: (0, 0))]
    out_spec = pl.BlockSpec((bc, out_p), lambda bi, ti: (bi, 0))

    scratch = [pltpu.VMEM((t_chunk, bc, hidden_p), jnp.float32),   # act chunk
               pltpu.VMEM((n_layers, bc, hidden_p), jnp.float32)]  # h carry

    # --- explicit VMEM budget (review item) ---------------------------------
    w_bytes = sum(int(a.size) * a.dtype.itemsize for a in flat[1:])
    est = (2 * t_chunk * bc * e_p * itemsize      # double-buffered x chunk
           + 2 * w_bytes                          # weights (conservative x2)
           + 2 * bc * out_p * 4                   # output block
           + t_chunk * bc * hidden_p * 4          # activation scratch
           + n_layers * bc * hidden_p * 4)        # per-layer h carry
    vmem_limit = int(min(64 << 20, max(16 << 20, int(est * 1.5) + (2 << 20))))

    kernel = _make_fused_rnn_kernel(
        n_layers=n_layers, seq_len=seq_len, t_chunk=t_chunk,
        n_t_chunks=n_t_chunks, bc=bc, hidden_p=hidden_p,
        steps_per=steps_per, time_padded=time_padded)

    return pl.pallas_call(
        kernel,
        out_shape=jax.ShapeDtypeStruct((b_pad, out_p), jnp.float32),
        grid_spec=pltpu.PrefetchScalarGridSpec(
            num_scalar_prefetch=0,
            grid=(nb, n_t_chunks),
            in_specs=in_specs,
            out_specs=out_spec,
            scratch_shapes=scratch),
        compiler_params=pltpu.CompilerParams(
            # Batch chunks are independent (use num_batch_chunks=2 on v7x to
            # occupy both TensorCores); time chunks carry h -> "arbitrary".
            dimension_semantics=("parallel", "arbitrary"),
            vmem_limit_bytes=vmem_limit),
    )(*flat)


# -----------------------------------------------------------------------------
# Parameters (same init as PyTorch defaults, deterministic in-script).
# -----------------------------------------------------------------------------
def init_params(key, vocab_size, embedding_dim, hidden_dim, output_dim,
                n_layers, pad_idx):
    keys = jax.random.split(key, 3 + 4 * n_layers)
    params = {}

    # nn.Embedding: N(0, 1), padding_idx row zeroed.
    emb = jax.random.normal(keys[0], (vocab_size, embedding_dim), jnp.float32)
    emb = emb.at[pad_idx].set(0.0)
    params["embedding"] = emb

    # nn.RNN: U(-1/sqrt(H), 1/sqrt(H)) for all weights/biases.
    k = 1.0 / jnp.sqrt(hidden_dim)
    layers = []
    for l in range(n_layers):
        in_dim = embedding_dim if l == 0 else hidden_dim
        w_ih = jax.random.uniform(keys[3 + 4 * l], (hidden_dim, in_dim),
                                  jnp.float32, -k, k)
        w_hh = jax.random.uniform(keys[4 + 4 * l], (hidden_dim, hidden_dim),
                                  jnp.float32, -k, k)
        b_ih = jax.random.uniform(keys[5 + 4 * l], (hidden_dim,),
                                  jnp.float32, -k, k)
        b_hh = jax.random.uniform(keys[6 + 4 * l], (hidden_dim,),
                                  jnp.float32, -k, k)
        layers.append({
            "w_ih_t": w_ih.T,                        # (in_dim, H)
            "w_hh_t": w_hh.T,                        # (H, H)
            "b": (b_ih + b_hh).reshape(1, hidden_dim),
        })
    params["rnn_layers"] = layers

    # nn.Linear: U(-1/sqrt(H), 1/sqrt(H)).
    kf = 1.0 / jnp.sqrt(hidden_dim)
    w_fc = jax.random.uniform(keys[1], (output_dim, hidden_dim),
                              jnp.float32, -kf, kf)
    b_fc = jax.random.uniform(keys[2], (output_dim,), jnp.float32, -kf, kf)
    params["fc_w_t"] = w_fc.T                        # (H, O)
    params["fc_b"] = b_fc.reshape(1, output_dim)
    return params


# -----------------------------------------------------------------------------
# Full forward (embedding gather in plain JAX; everything else in one kernel).
# -----------------------------------------------------------------------------
@functools.partial(jax.jit, static_argnames=("num_batch_chunks",))
def rnn_forward(params, text, text_lengths, num_batch_chunks=1):
    # text: (T, B) int32, time-major (nn.RNN default batch_first=False).
    # text_lengths is unused: the reference forward calls the RNN on the
    # unpacked sequence, so the last hidden state is always h at t = T-1.
    del text_lengths

    emb = params["embedding"][text]                  # (T, B, E), glue gather
    T, B, E = emb.shape
    H = params["rnn_layers"][0]["w_hh_t"].shape[0]
    O = params["fc_w_t"].shape[1]

    # Lane-pad feature dims to 128, sublane-pad batch (zero padding is exact:
    # padded hidden units stay 0 through tanh, padded rows never read back).
    e_p = _round_up(E, 128)
    h_p = _round_up(H, 128)
    o_p = _round_up(O, 128)
    sub = 8 if jnp.dtype(MATMUL_DTYPE).itemsize == 4 else 16
    b_pad = _round_up(max(B, 1), sub * num_batch_chunks)

    x = jnp.pad(emb, ((0, 0), (0, b_pad - B), (0, e_p - E))).astype(MATMUL_DTYPE)

    layer_weights = []
    for l, lw in enumerate(params["rnn_layers"]):
        in_dim = E if l == 0 else H
        in_p = e_p if l == 0 else h_p
        w_ih = jnp.pad(lw["w_ih_t"],
                       ((0, in_p - in_dim), (0, h_p - H))).astype(MATMUL_DTYPE)
        w_hh = jnp.pad(lw["w_hh_t"],
                       ((0, h_p - H), (0, h_p - H))).astype(MATMUL_DTYPE)
        b = jnp.pad(lw["b"], ((0, 0), (0, h_p - H)))              # f32
        layer_weights.append((w_ih, w_hh, b))
    fc_w = jnp.pad(params["fc_w_t"],
                   ((0, h_p - H), (0, o_p - O))).astype(MATMUL_DTYPE)
    fc_b = jnp.pad(params["fc_b"], ((0, 0), (0, o_p - O)))         # f32

    out = fused_rnn_call(x, layer_weights, fc_w, fc_b,
                         num_batch_chunks=num_batch_chunks)
    return out[:B, :O]                               # drop padded rows/cols


# Pure-JAX reference for the correctness check.
def rnn_forward_ref(params, text, text_lengths):
    del text_lengths
    x = params["embedding"][text].astype(jnp.float32)   # (T, B, E)
    h_last = None
    for layer in params["rnn_layers"]:
        w_ih_t, w_hh_t, b = layer["w_ih_t"], layer["w_hh_t"], layer["b"]

        def step(h, x_t, w_ih_t=w_ih_t, w_hh_t=w_hh_t, b=b):
            h_new = jnp.tanh(x_t @ w_ih_t + h @ w_hh_t + b)
            return h_new, h_new

        h0 = jnp.zeros((x.shape[1], w_hh_t.shape[0]), jnp.float32)
        h_last, x = lax.scan(step, h0, x)
    return h_last @ params["fc_w_t"] + params["fc_b"]


if __name__ == "__main__":
    VOCAB, EMB, HID, OUT, NLAYERS, PAD = 50, 32, 32, 4, 2, 0
    T, B = 8, 2

    key = jax.random.PRNGKey(0)
    pkey, tkey = jax.random.split(key)

    params = init_params(pkey, VOCAB, EMB, HID, OUT, NLAYERS, PAD)

    text = jax.random.randint(tkey, (T, B), 1, VOCAB, dtype=jnp.int32)
    text_lengths = jnp.full((B,), T, dtype=jnp.int32)

    out = rnn_forward(params, text, text_lengths)
    jax.block_until_ready(out)
    assert out.shape == (B, OUT)

    ref = rnn_forward_ref(params, text, text_lengths)
    # Note: if MATMUL_DTYPE is switched to bf16, relax this tolerance.
    assert jnp.allclose(out, ref, atol=1e-4, rtol=1e-4), (out, ref)

    print("KERNEL_OK")
</pallas_src>

<mosaic_0001>
module attributes {stable_mosaic.version = 11 : i64} {
  func.func @kernel(%arg0: i32, %arg1: i32, %arg2: memref<8x8x128xf32, #tpu.memory_space<vmem>>, %arg3: memref<128x128xf32, #tpu.memory_space<vmem>>, %arg4: memref<128x128xf32, #tpu.memory_space<vmem>>, %arg5: memref<1x128xf32, #tpu.memory_space<vmem>>, %arg6: memref<128x128xf32, #tpu.memory_space<vmem>>, %arg7: memref<128x128xf32, #tpu.memory_space<vmem>>, %arg8: memref<1x128xf32, #tpu.memory_space<vmem>>, %arg9: memref<128x128xf32, #tpu.memory_space<vmem>>, %arg10: memref<1x128xf32, #tpu.memory_space<vmem>>, %arg11: memref<8x128xf32, #tpu.memory_space<vmem>>, %arg12: memref<8x8x128xf32, #tpu.memory_space<vmem>>, %arg13: memref<2x8x128xf32, #tpu.memory_space<vmem>>) attributes {dimension_semantics = [#tpu.dimension_semantics<parallel>, #tpu.dimension_semantics<arbitrary>], iteration_bounds = array<i64: 1, 1>, scalar_prefetch = 0 : i64, scratch_operands = 2 : i64, tpu.core_type = #tpu.core_type<tc>, window_params = [{transform_indices = @transform_0, window_bounds = array<i64: 8, 8, 128>}, {pipeline_mode = #tpu.pipeline_mode<synchronous>, transform_indices = @transform_1, window_bounds = array<i64: 128, 128>}, {pipeline_mode = #tpu.pipeline_mode<synchronous>, transform_indices = @transform_2, window_bounds = array<i64: 128, 128>}, {pipeline_mode = #tpu.pipeline_mode<synchronous>, transform_indices = @transform_3, window_bounds = array<i64: 1, 128>}, {pipeline_mode = #tpu.pipeline_mode<synchronous>, transform_indices = @transform_4, window_bounds = array<i64: 128, 128>}, {pipeline_mode = #tpu.pipeline_mode<synchronous>, transform_indices = @transform_5, window_bounds = array<i64: 128, 128>}, {pipeline_mode = #tpu.pipeline_mode<synchronous>, transform_indices = @transform_6, window_bounds = array<i64: 1, 128>}, {pipeline_mode = #tpu.pipeline_mode<synchronous>, transform_indices = @transform_7, window_bounds = array<i64: 128, 128>}, {pipeline_mode = #tpu.pipeline_mode<synchronous>, transform_indices = @transform_8, window_bounds = array<i64: 1, 128>}, {transform_indices = @transform_9, window_bounds = array<i64: 8, 128>}]} {
    %c0_i32 = arith.constant 0 : i32
    %0 = arith.cmpi eq, %arg1, %c0_i32 : i32
    %1 = arith.extui %0 : i1 to i32
    %c0_i32_0 = arith.constant 0 : i32
    %2 = arith.cmpi ne, %1, %c0_i32_0 : i32
    scf.if %2 {
      %cst_196 = arith.constant 0.000000e+00 : f32
      %234 = vector.broadcast %cst_196 : f32 to vector<2x8x128xf32>
      %c0_197 = arith.constant 0 : index
      %c0_198 = arith.constant 0 : index
      %c0_199 = arith.constant 0 : index
      %235 = vector.load %arg13[%c0_197, %c0_198, %c0_199] : memref<2x8x128xf32, #tpu.memory_space<vmem>>, vector<2x8x128xf32>
      tpu.vector_store %arg13[%c0_197, %c0_198, %c0_199], %234 {strides = array<i32>} : memref<2x8x128xf32, #tpu.memory_space<vmem>>, vector<2x8x128xf32>,
    } else {
    }
    %c0 = arith.constant 0 : index
    %c0_1 = arith.constant 0 : index
    %3 = vector.load %arg3[%c0, %c0_1] : memref<128x128xf32, #tpu.memory_space<vmem>>, vector<128x128xf32>
    %c0_2 = arith.constant 0 : index
    %c0_3 = arith.constant 0 : index
    %4 = vector.load %arg4[%c0_2, %c0_3] : memref<128x128xf32, #tpu.memory_space<vmem>>, vector<128x128xf32>
    %c0_4 = arith.constant 0 : index
    %c0_5 = arith.constant 0 : index
    %5 = vector.load %arg5[%c0_4, %c0_5] : memref<1x128xf32, #tpu.memory_space<vmem>>, vector<1x128xf32>
    %c0_6 = arith.constant 0 : index
    %c0_7 = arith.constant 0 : index
    %c0_8 = arith.constant 0 : index
    %6 = vector.load %arg2[%c0_6, %c0_7, %c0_8] : memref<8x8x128xf32, #tpu.memory_space<vmem>>, vector<8x8x128xf32>
    %7 = vector.shape_cast %6 : vector<8x8x128xf32> to vector<64x128xf32>
    %cst = arith.constant dense<0.000000e+00> : vector<64x128xf32>
    %8 = tpu.matmul %7, %3, %cst {dimension_numbers = #tpu.dot_dimension_numbers<[1], [0], [0], [1], [0, 0, 1, 1], [], []>} : vector<64x128xf32>, vector<128x128xf32>, vector<64x128xf32> -> vector<64x128xf32>
    %9 = vector.broadcast %5 : vector<1x128xf32> to vector<64x128xf32>
    %10 = arith.addf %8, %9 : vector<64x128xf32>
    %11 = vector.shape_cast %10 : vector<64x128xf32> to vector<8x8x128xf32>
    %c0_9 = arith.constant 0 : index
    %c0_10 = arith.constant 0 : index
    %c0_11 = arith.constant 0 : index
    %12 = vector.load %arg12[%c0_9, %c0_10, %c0_11] : memref<8x8x128xf32, #tpu.memory_space<vmem>>, vector<8x8x128xf32>
    tpu.vector_store %arg12[%c0_9, %c0_10, %c0_11], %11 {strides = array<i32>} : memref<8x8x128xf32, #tpu.memory_space<vmem>>, vector<8x8x128xf32>,
    %c0_i32_12 = arith.constant 0 : i32
    %c0_13 = arith.constant 0 : index
    %c0_14 = arith.constant 0 : index
    %c0_15 = arith.constant 0 : index
    %13 = vector.load %arg13[%c0_13, %c0_14, %c0_15] : memref<2x8x128xf32, #tpu.memory_space<vmem>>, vector<1x8x128xf32>
    %14 = vector.shape_cast %13 : vector<1x8x128xf32> to vector<8x128xf32>
    %15 = arith.index_cast %c0_i32_12 : i32 to index
    %c0_16 = arith.constant 0 : index
    %c0_17 = arith.constant 0 : index
    %16 = vector.load %arg12[%15, %c0_16, %c0_17] : memref<8x8x128xf32, #tpu.memory_space<vmem>>, vector<1x8x128xf32>
    %17 = vector.shape_cast %16 : vector<1x8x128xf32> to vector<8x128xf32>
    %cst_18 = arith.constant dense<0.000000e+00> : vector<8x128xf32>
    %18 = tpu.matmul %14, %4, %cst_18 {dimension_numbers = #tpu.dot_dimension_numbers<[1], [0], [0], [1], [0, 0, 1, 1], [], []>} : vector<8x128xf32>, vector<128x128xf32>, vector<8x128xf32> -> vector<8x128xf32>
    %19 = arith.addf %17, %18 : vector<8x128xf32>
    %20 = math.tanh %19 : vector<8x128xf32>
    %c0_19 = arith.constant 0 : index
    %c0_20 = arith.constant 0 : index
    %c0_21 = arith.constant 0 : index
    %21 = vector.load %arg13[%c0_19, %c0_20, %c0_21] : memref<2x8x128xf32, #tpu.memory_space<vmem>>, vector<1x8x128xf32>
    %22 = vector.shape_cast %21 : vector<1x8x128xf32> to vector<8x128xf32>
    %23 = vector.shape_cast %20 : vector<8x128xf32> to vector<1x8x128xf32>
    tpu.vector_store %arg13[%c0_19, %c0_20, %c0_21], %23 {strides = array<i32>} : memref<2x8x128xf32, #tpu.memory_space<vmem>>, vector<1x8x128xf32>,
    %24 = arith.index_cast %c0_i32_12 : i32 to index
    %c0_22 = arith.constant 0 : index
    %c0_23 = arith.constant 0 : index
    %25 = vector.load %arg12[%24, %c0_22, %c0_23] : memref<8x8x128xf32, #tpu.memory_space<vmem>>, vector<1x8x128xf32>
    %26 = vector.shape_cast %25 : vector<1x8x128xf32> to vector<8x128xf32>
    %27 = vector.shape_cast %20 : vector<8x128xf32> to vector<1x8x128xf32>
    tpu.vector_store %arg12[%24, %c0_22, %c0_23], %27 {strides = array<i32>} : memref<8x8x128xf32, #tpu.memory_space<vmem>>, vector<1x8x128xf32>,
    %c1_i32 = arith.constant 1 : i32
    %c0_24 = arith.constant 0 : index
    %c0_25 = arith.constant 0 : index
    %c0_26 = arith.constant 0 : index
    %28 = vector.load %arg13[%c0_24, %c0_25, %c0_26] : memref<2x8x128xf32, #tpu.memory_space<vmem>>, vector<1x8x128xf32>
    %29 = vector.shape_cast %28 : vector<1x8x128xf32> to vector<8x128xf32>
    %30 = arith.index_cast %c1_i32 : i32 to index
    %c0_27 = arith.constant 0 : index
    %c0_28 = arith.constant 0 : index
    %31 = vector.load %arg12[%30, %c0_27, %c0_28] : memref<8x8x128xf32, #tpu.memory_space<vmem>>, vector<1x8x128xf32>
    %32 = vector.shape_cast %31 : vector<1x8x128xf32> to vector<8x128xf32>
    %cst_29 = arith.constant dense<0.000000e+00> : vector<8x128xf32>
    %33 = tpu.matmul %29, %4, %cst_29 {dimension_numbers = #tpu.dot_dimension_numbers<[1], [0], [0], [1], [0, 0, 1, 1], [], []>} : vector<8x128xf32>, vector<128x128xf32>, vector<8x128xf32> -> vector<8x128xf32>
    %34 = arith.addf %32, %33 : vector<8x128xf32>
    %35 = math.tanh %34 : vector<8x128xf32>
    %c0_30 = arith.constant 0 : index
    %c0_31 = arith.constant 0 : index
    %c0_32 = arith.constant 0 : index
    %36 = vector.load %arg13[%c0_30, %c0_31, %c0_32] : memref<2x8x128xf32, #tpu.memory_space<vmem>>, vector<1x8x128xf32>
    %37 = vector.shape_cast %36 : vector<1x8x128xf32> to vector<8x128xf32>
    %38 = vector.shape_cast %35 : vector<8x128xf32> to vector<1x8x128xf32>
    tpu.vector_store %arg13[%c0_30, %c0_31, %c0_32], %38 {strides = array<i32>} : memref<2x8x128xf32, #tpu.memory_space<vmem>>, vector<1x8x128xf32>,
    %39 = arith.index_cast %c1_i32 : i32 to index
    %c0_33 = arith.constant 0 : index
    %c0_34 = arith.constant 0 : index
    %40 = vector.load %arg12[%39, %c0_33, %c0_34] : memref<8x8x128xf32, #tpu.memory_space<vmem>>, vector<1x8x128xf32>
    %41 = vector.shape_cast %40 : vector<1x8x128xf32> to vector<8x128xf32>
    %42 = vector.shape_cast %35 : vector<8x128xf32> to vector<1x8x128xf32>
    tpu.vector_store %arg12[%39, %c0_33, %c0_34], %42 {strides = array<i32>} : memref<8x8x128xf32, #tpu.memory_space<vmem>>, vector<1x8x128xf32>,
    %c2_i32 = arith.constant 2 : i32
    %c0_35 = arith.constant 0 : index
    %c0_36 = arith.constant 0 : index
    %c0_37 = arith.constant 0 : index
    %43 = vector.load %arg13[%c0_35, %c0_36, %c0_37] : memref<2x8x128xf32, #tpu.memory_space<vmem>>, vector<1x8x128xf32>
    %44 = vector.shape_cast %43 : vector<1x8x128xf32> to vector<8x128xf32>
    %45 = arith.index_cast %c2_i32 : i32 to index
    %c0_38 = arith.constant 0 : index
    %c0_39 = arith.constant 0 : index
    %46 = vector.load %arg12[%45, %c0_38, %c0_39] : memref<8x8x128xf32, #tpu.memory_space<vmem>>, vector<1x8x128xf32>
    %47 = vector.shape_cast %46 : vector<1x8x128xf32> to vector<8x128xf32>
    %cst_40 = arith.constant dense<0.000000e+00> : vector<8x128xf32>
    %48 = tpu.matmul %44, %4, %cst_40 {dimension_numbers = #tpu.dot_dimension_numbers<[1], [0], [0], [1], [0, 0, 1, 1], [], []>} : vector<8x128xf32>, vector<128x128xf32>, vector<8x128xf32> -> vector<8x128xf32>
    %49 = arith.addf %47, %48 : vector<8x128xf32>
    %50 = math.tanh %49 : vector<8x128xf32>
    %c0_41 = arith.constant 0 : index
    %c0_42 = arith.constant 0 : index
    %c0_43 = arith.constant 0 : index
    %51 = vector.load %arg13[%c0_41, %c0_42, %c0_43] : memref<2x8x128xf32, #tpu.memory_space<vmem>>, vector<1x8x128xf32>
    %52 = vector.shape_cast %51 : vector<1x8x128xf32> to vector<8x128xf32>
    %53 = vector.shape_cast %50 : vector<8x128xf32> to vector<1x8x128xf32>
    tpu.vector_store %arg13[%c0_41, %c0_42, %c0_43], %53 {strides = array<i32>} : memref<2x8x128xf32, #tpu.memory_space<vmem>>, vector<1x8x128xf32>,
    %54 = arith.index_cast %c2_i32 : i32 to index
    %c0_44 = arith.constant 0 : index
    %c0_45 = arith.constant 0 : index
    %55 = vector.load %arg12[%54, %c0_44, %c0_45] : memref<8x8x128xf32, #tpu.memory_space<vmem>>, vector<1x8x128xf32>
    %56 = vector.shape_cast %55 : vector<1x8x128xf32> to vector<8x128xf32>
    %57 = vector.shape_cast %50 : vector<8x128xf32> to vector<1x8x128xf32>
    tpu.vector_store %arg12[%54, %c0_44, %c0_45], %57 {strides = array<i32>} : memref<8x8x128xf32, #tpu.memory_space<vmem>>, vector<1x8x128xf32>,
    %c3_i32 = arith.constant 3 : i32
    %c0_46 = arith.constant 0 : index
    %c0_47 = arith.constant 0 : index
    %c0_48 = arith.constant 0 : index
    %58 = vector.load %arg13[%c0_46, %c0_47, %c0_48] : memref<2x8x128xf32, #tpu.memory_space<vmem>>, vector<1x8x128xf32>
    %59 = vector.shape_cast %58 : vector<1x8x128xf32> to vector<8x128xf32>
    %60 = arith.index_cast %c3_i32 : i32 to index
    %c0_49 = arith.constant 0 : index
    %c0_50 = arith.constant 0 : index
    %61 = vector.load %arg12[%60, %c0_49, %c0_50] : memref<8x8x128xf32, #tpu.memory_space<vmem>>, vector<1x8x128xf32>
    %62 = vector.shape_cast %61 : vector<1x8x128xf32> to vector<8x128xf32>
    %cst_51 = arith.constant dense<0.000000e+00> : vector<8x128xf32>
    %63 = tpu.matmul %59, %4, %cst_51 {dimension_numbers = #tpu.dot_dimension_numbers<[1], [0], [0], [1], [0, 0, 1, 1], [], []>} : vector<8x128xf32>, vector<128x128xf32>, vector<8x128xf32> -> vector<8x128xf32>
    %64 = arith.addf %62, %63 : vector<8x128xf32>
    %65 = math.tanh %64 : vector<8x128xf32>
    %c0_52 = arith.constant 0 : index
    %c0_53 = arith.constant 0 : index
    %c0_54 = arith.constant 0 : index
    %66 = vector.load %arg13[%c0_52, %c0_53, %c0_54] : memref<2x8x128xf32, #tpu.memory_space<vmem>>, vector<1x8x128xf32>
    %67 = vector.shape_cast %66 : vector<1x8x128xf32> to vector<8x128xf32>
    %68 = vector.shape_cast %65 : vector<8x128xf32> to vector<1x8x128xf32>
    tpu.vector_store %arg13[%c0_52, %c0_53, %c0_54], %68 {strides = array<i32>} : memref<2x8x128xf32, #tpu.memory_space<vmem>>, vector<1x8x128xf32>,
    %69 = arith.index_cast %c3_i32 : i32 to index
    %c0_55 = arith.constant 0 : index
    %c0_56 = arith.constant 0 : index
    %70 = vector.load %arg12[%69, %c0_55, %c0_56] : memref<8x8x128xf32, #tpu.memory_space<vmem>>, vector<1x8x128xf32>
    %71 = vector.shape_cast %70 : vector<1x8x128xf32> to vector<8x128xf32>
    %72 = vector.shape_cast %65 : vector<8x128xf32> to vector<1x8x128xf32>
    tpu.vector_store %arg12[%69, %c0_55, %c0_56], %72 {strides = array<i32>} : memref<8x8x128xf32, #tpu.memory_space<vmem>>, vector<1x8x128xf32>,
    %c4_i32 = arith.constant 4 : i32
    %c0_57 = arith.constant 0 : index
    %c0_58 = arith.constant 0 : index
    %c0_59 = arith.constant 0 : index
    %73 = vector.load %arg13[%c0_57, %c0_58, %c0_59] : memref<2x8x128xf32, #tpu.memory_space<vmem>>, vector<1x8x128xf32>
    %74 = vector.shape_cast %73 : vector<1x8x128xf32> to vector<8x128xf32>
    %75 = arith.index_cast %c4_i32 : i32 to index
    %c0_60 = arith.constant 0 : index
    %c0_61 = arith.constant 0 : index
    %76 = vector.load %arg12[%75, %c0_60, %c0_61] : memref<8x8x128xf32, #tpu.memory_space<vmem>>, vector<1x8x128xf32>
    %77 = vector.shape_cast %76 : vector<1x8x128xf32> to vector<8x128xf32>
    %cst_62 = arith.constant dense<0.000000e+00> : vector<8x128xf32>
    %78 = tpu.matmul %74, %4, %cst_62 {dimension_numbers = #tpu.dot_dimension_numbers<[1], [0], [0], [1], [0, 0, 1, 1], [], []>} : vector<8x128xf32>, vector<128x128xf32>, vector<8x128xf32> -> vector<8x128xf32>
    %79 = arith.addf %77, %78 : vector<8x128xf32>
    %80 = math.tanh %79 : vector<8x128xf32>
    %c0_63 = arith.constant 0 : index
    %c0_64 = arith.constant 0 : index
    %c0_65 = arith.constant 0 : index
    %81 = vector.load %arg13[%c0_63, %c0_64, %c0_65] : memref<2x8x128xf32, #tpu.memory_space<vmem>>, vector<1x8x128xf32>
    %82 = vector.shape_cast %81 : vector<1x8x128xf32> to vector<8x128xf32>
    %83 = vector.shape_cast %80 : vector<8x128xf32> to vector<1x8x128xf32>
    tpu.vector_store %arg13[%c0_63, %c0_64, %c0_65], %83 {strides = array<i32>} : memref<2x8x128xf32, #tpu.memory_space<vmem>>, vector<1x8x128xf32>,
    %84 = arith.index_cast %c4_i32 : i32 to index
    %c0_66 = arith.constant 0 : index
    %c0_67 = arith.constant 0 : index
    %85 = vector.load %arg12[%84, %c0_66, %c0_67] : memref<8x8x128xf32, #tpu.memory_space<vmem>>, vector<1x8x128xf32>
    %86 = vector.shape_cast %85 : vector<1x8x128xf32> to vector<8x128xf32>
    %87 = vector.shape_cast %80 : vector<8x128xf32> to vector<1x8x128xf32>
    tpu.vector_store %arg12[%84, %c0_66, %c0_67], %87 {strides = array<i32>} : memref<8x8x128xf32, #tpu.memory_space<vmem>>, vector<1x8x128xf32>,
    %c5_i32 = arith.constant 5 : i32
    %c0_68 = arith.constant 0 : index
    %c0_69 = arith.constant 0 : index
    %c0_70 = arith.constant 0 : index
    %88 = vector.load %arg13[%c0_68, %c0_69, %c0_70] : memref<2x8x128xf32, #tpu.memory_space<vmem>>, vector<1x8x128xf32>
    %89 = vector.shape_cast %88 : vector<1x8x128xf32> to vector<8x128xf32>
    %90 = arith.index_cast %c5_i32 : i32 to index
    %c0_71 = arith.constant 0 : index
    %c0_72 = arith.constant 0 : index
    %91 = vector.load %arg12[%90, %c0_71, %c0_72] : memref<8x8x128xf32, #tpu.memory_space<vmem>>, vector<1x8x128xf32>
    %92 = vector.shape_cast %91 : vector<1x8x128xf32> to vector<8x128xf32>
    %cst_73 = arith.constant dense<0.000000e+00> : vector<8x128xf32>
    %93 = tpu.matmul %89, %4, %cst_73 {dimension_numbers = #tpu.dot_dimension_numbers<[1], [0], [0], [1], [0, 0, 1, 1], [], []>} : vector<8x128xf32>, vector<128x128xf32>, vector<8x128xf32> -> vector<8x128xf32>
    %94 = arith.addf %92, %93 : vector<8x128xf32>
    %95 = math.tanh %94 : vector<8x128xf32>
    %c0_74 = arith.constant 0 : index
    %c0_75 = arith.constant 0 : index
    %c0_76 = arith.constant 0 : index
    %96 = vector.load %arg13[%c0_74, %c0_75, %c0_76] : memref<2x8x128xf32, #tpu.memory_space<vmem>>, vector<1x8x128xf32>
    %97 = vector.shape_cast %96 : vector<1x8x128xf32> to vector<8x128xf32>
    %98 = vector.shape_cast %95 : vector<8x128xf32> to vector<1x8x128xf32>
    tpu.vector_store %arg13[%c0_74, %c0_75, %c0_76], %98 {strides = array<i32>} : memref<2x8x128xf32, #tpu.memory_space<vmem>>, vector<1x8x128xf32>,
    %99 = arith.index_cast %c5_i32 : i32 to index
    %c0_77 = arith.constant 0 : index
    %c0_78 = arith.constant 0 : index
    %100 = vector.load %arg12[%99, %c0_77, %c0_78] : memref<8x8x128xf32, #tpu.memory_space<vmem>>, vector<1x8x128xf32>
    %101 = vector.shape_cast %100 : vector<1x8x128xf32> to vector<8x128xf32>
    %102 = vector.shape_cast %95 : vector<8x128xf32> to vector<1x8x128xf32>
    tpu.vector_store %arg12[%99, %c0_77, %c0_78], %102 {strides = array<i32>} : memref<8x8x128xf32, #tpu.memory_space<vmem>>, vector<1x8x128xf32>,
    %c6_i32 = arith.constant 6 : i32
    %c0_79 = arith.constant 0 : index
    %c0_80 = arith.constant 0 : index
    %c0_81 = arith.constant 0 : index
    %103 = vector.load %arg13[%c0_79, %c0_80, %c0_81] : memref<2x8x128xf32, #tpu.memory_space<vmem>>, vector<1x8x128xf32>
    %104 = vector.shape_cast %103 : vector<1x8x128xf32> to vector<8x128xf32>
    %105 = arith.index_cast %c6_i32 : i32 to index
    %c0_82 = arith.constant 0 : index
    %c0_83 = arith.constant 0 : index
    %106 = vector.load %arg12[%105, %c0_82, %c0_83] : memref<8x8x128xf32, #tpu.memory_space<vmem>>, vector<1x8x128xf32>
    %107 = vector.shape_cast %106 : vector<1x8x128xf32> to vector<8x128xf32>
    %cst_84 = arith.constant dense<0.000000e+00> : vector<8x128xf32>
    %108 = tpu.matmul %104, %4, %cst_84 {dimension_numbers = #tpu.dot_dimension_numbers<[1], [0], [0], [1], [0, 0, 1, 1], [], []>} : vector<8x128xf32>, vector<128x128xf32>, vector<8x128xf32> -> vector<8x128xf32>
    %109 = arith.addf %107, %108 : vector<8x128xf32>
    %110 = math.tanh %109 : vector<8x128xf32>
    %c0_85 = arith.constant 0 : index
    %c0_86 = arith.constant 0 : index
    %c0_87 = arith.constant 0 : index
    %111 = vector.load %arg13[%c0_85, %c0_86, %c0_87] : memref<2x8x128xf32, #tpu.memory_space<vmem>>, vector<1x8x128xf32>
    %112 = vector.shape_cast %111 : vector<1x8x128xf32> to vector<8x128xf32>
    %113 = vector.shape_cast %110 : vector<8x128xf32> to vector<1x8x128xf32>
    tpu.vector_store %arg13[%c0_85, %c0_86, %c0_87], %113 {strides = array<i32>} : memref<2x8x128xf32, #tpu.memory_space<vmem>>, vector<1x8x128xf32>,
    %114 = arith.index_cast %c6_i32 : i32 to index
    %c0_88 = arith.constant 0 : index
    %c0_89 = arith.constant 0 : index
    %115 = vector.load %arg12[%114, %c0_88, %c0_89] : memref<8x8x128xf32, #tpu.memory_space<vmem>>, vector<1x8x128xf32>
    %116 = vector.shape_cast %115 : vector<1x8x128xf32> to vector<8x128xf32>
    %117 = vector.shape_cast %110 : vector<8x128xf32> to vector<1x8x128xf32>
    tpu.vector_store %arg12[%114, %c0_88, %c0_89], %117 {strides = array<i32>} : memref<8x8x128xf32, #tpu.memory_space<vmem>>, vector<1x8x128xf32>,
    %c7_i32 = arith.constant 7 : i32
    %c0_90 = arith.constant 0 : index
    %c0_91 = arith.constant 0 : index
    %c0_92 = arith.constant 0 : index
    %118 = vector.load %arg13[%c0_90, %c0_91, %c0_92] : memref<2x8x128xf32, #tpu.memory_space<vmem>>, vector<1x8x128xf32>
    %119 = vector.shape_cast %118 : vector<1x8x128xf32> to vector<8x128xf32>
    %120 = arith.index_cast %c7_i32 : i32 to index
    %c0_93 = arith.constant 0 : index
    %c0_94 = arith.constant 0 : index
    %121 = vector.load %arg12[%120, %c0_93, %c0_94] : memref<8x8x128xf32, #tpu.memory_space<vmem>>, vector<1x8x128xf32>
    %122 = vector.shape_cast %121 : vector<1x8x128xf32> to vector<8x128xf32>
    %cst_95 = arith.constant dense<0.000000e+00> : vector<8x128xf32>
    %123 = tpu.matmul %119, %4, %cst_95 {dimension_numbers = #tpu.dot_dimension_numbers<[1], [0], [0], [1], [0, 0, 1, 1], [], []>} : vector<8x128xf32>, vector<128x128xf32>, vector<8x128xf32> -> vector<8x128xf32>
    %124 = arith.addf %122, %123 : vector<8x128xf32>
    %125 = math.tanh %124 : vector<8x128xf32>
    %c0_96 = arith.constant 0 : index
    %c0_97 = arith.constant 0 : index
    %c0_98 = arith.constant 0 : index
    %126 = vector.load %arg13[%c0_96, %c0_97, %c0_98] : memref<2x8x128xf32, #tpu.memory_space<vmem>>, vector<1x8x128xf32>
    %127 = vector.shape_cast %126 : vector<1x8x128xf32> to vector<8x128xf32>
    %128 = vector.shape_cast %125 : vector<8x128xf32> to vector<1x8x128xf32>
    tpu.vector_store %arg13[%c0_96, %c0_97, %c0_98], %128 {strides = array<i32>} : memref<2x8x128xf32, #tpu.memory_space<vmem>>, vector<1x8x128xf32>,
    %129 = arith.index_cast %c7_i32 : i32 to index
    %c0_99 = arith.constant 0 : index
    %c0_100 = arith.constant 0 : index
    %130 = vector.load %arg12[%129, %c0_99, %c0_100] : memref<8x8x128xf32, #tpu.memory_space<vmem>>, vector<1x8x128xf32>
    %131 = vector.shape_cast %130 : vector<1x8x128xf32> to vector<8x128xf32>
    %132 = vector.shape_cast %125 : vector<8x128xf32> to vector<1x8x128xf32>
    tpu.vector_store %arg12[%129, %c0_99, %c0_100], %132 {strides = array<i32>} : memref<8x8x128xf32, #tpu.memory_space<vmem>>, vector<1x8x128xf32>,
    %c8_i32 = arith.constant 8 : i32
    %c0_101 = arith.constant 0 : index
    %c0_102 = arith.constant 0 : index
    %133 = vector.load %arg6[%c0_101, %c0_102] : memref<128x128xf32, #tpu.memory_space<vmem>>, vector<128x128xf32>
    %c0_103 = arith.constant 0 : index
    %c0_104 = arith.constant 0 : index
    %134 = vector.load %arg7[%c0_103, %c0_104] : memref<128x128xf32, #tpu.memory_space<vmem>>, vector<128x128xf32>
    %c0_105 = arith.constant 0 : index
    %c0_106 = arith.constant 0 : index
    %135 = vector.load %arg8[%c0_105, %c0_106] : memref<1x128xf32, #tpu.memory_space<vmem>>, vector<1x128xf32>
    %c0_107 = arith.constant 0 : index
    %c0_108 = arith.constant 0 : index
    %c0_109 = arith.constant 0 : index
    %136 = vector.load %arg12[%c0_107, %c0_108, %c0_109] : memref<8x8x128xf32, #tpu.memory_space<vmem>>, vector<8x8x128xf32>
    %137 = vector.shape_cast %136 : vector<8x8x128xf32> to vector<64x128xf32>
    %cst_110 = arith.constant dense<0.000000e+00> : vector<64x128xf32>
    %138 = tpu.matmul %137, %133, %cst_110 {dimension_numbers = #tpu.dot_dimension_numbers<[1], [0], [0], [1], [0, 0, 1, 1], [], []>} : vector<64x128xf32>, vector<128x128xf32>, vector<64x128xf32> -> vector<64x128xf32>
    %139 = vector.broadcast %135 : vector<1x128xf32> to vector<64x128xf32>
    %140 = arith.addf %138, %139 : vector<64x128xf32>
    %141 = vector.shape_cast %140 : vector<64x128xf32> to vector<8x8x128xf32>
    %c0_111 = arith.constant 0 : index
    %c0_112 = arith.constant 0 : index
    %c0_113 = arith.constant 0 : index
    %142 = vector.load %arg12[%c0_111, %c0_112, %c0_113] : memref<8x8x128xf32, #tpu.memory_space<vmem>>, vector<8x8x128xf32>
    tpu.vector_store %arg12[%c0_111, %c0_112, %c0_113], %141 {strides = array<i32>} : memref<8x8x128xf32, #tpu.memory_space<vmem>>, vector<8x8x128xf32>,
    %c0_i32_114 = arith.constant 0 : i32
    %c1 = arith.constant 1 : index
    %c0_115 = arith.constant 0 : index
    %c0_116 = arith.constant 0 : index
    %143 = vector.load %arg13[%c1, %c0_115, %c0_116] : memref<2x8x128xf32, #tpu.memory_space<vmem>>, vector<1x8x128xf32>
    %144 = vector.shape_cast %143 : vector<1x8x128xf32> to vector<8x128xf32>
    %145 = arith.index_cast %c0_i32_114 : i32 to index
    %c0_117 = arith.constant 0 : index
    %c0_118 = arith.constant 0 : index
    %146 = vector.load %arg12[%145, %c0_117, %c0_118] : memref<8x8x128xf32, #tpu.memory_space<vmem>>, vector<1x8x128xf32>
    %147 = vector.shape_cast %146 : vector<1x8x128xf32> to vector<8x128xf32>
    %cst_119 = arith.constant dense<0.000000e+00> : vector<8x128xf32>
    %148 = tpu.matmul %144, %134, %cst_119 {dimension_numbers = #tpu.dot_dimension_numbers<[1], [0], [0], [1], [0, 0, 1, 1], [], []>} : vector<8x128xf32>, vector<128x128xf32>, vector<8x128xf32> -> vector<8x128xf32>
    %149 = arith.addf %147, %148 : vector<8x128xf32>
    %150 = math.tanh %149 : vector<8x128xf32>
    %c1_120 = arith.constant 1 : index
    %c0_121 = arith.constant 0 : index
    %c0_122 = arith.constant 0 : index
    %151 = vector.load %arg13[%c1_120, %c0_121, %c0_122] : memref<2x8x128xf32, #tpu.memory_space<vmem>>, vector<1x8x128xf32>
    %152 = vector.shape_cast %151 : vector<1x8x128xf32> to vector<8x128xf32>
    %153 = vector.shape_cast %150 : vector<8x128xf32> to vector<1x8x128xf32>
    tpu.vector_store %arg13[%c1_120, %c0_121, %c0_122], %153 {strides = array<i32>} : memref<2x8x128xf32, #tpu.memory_space<vmem>>, vector<1x8x128xf32>,
    %c1_i32_123 = arith.constant 1 : i32
    %c1_124 = arith.constant 1 : index
    %c0_125 = arith.constant 0 : index
    %c0_126 = arith.constant 0 : index
    %154 = vector.load %arg13[%c1_124, %c0_125, %c0_126] : memref<2x8x128xf32, #tpu.memory_space<vmem>>, vector<1x8x128xf32>
    %155 = vector.shape_cast %154 : vector<1x8x128xf32> to vector<8x128xf32>
    %156 = arith.index_cast %c1_i32_123 : i32 to index
    %c0_127 = arith.constant 0 : index
    %c0_128 = arith.constant 0 : index
    %157 = vector.load %arg12[%156, %c0_127, %c0_128] : memref<8x8x128xf32, #tpu.memory_space<vmem>>, vector<1x8x128xf32>
    %158 = vector.shape_cast %157 : vector<1x8x128xf32> to vector<8x128xf32>
    %cst_129 = arith.constant dense<0.000000e+00> : vector<8x128xf32>
    %159 = tpu.matmul %155, %134, %cst_129 {dimension_numbers = #tpu.dot_dimension_numbers<[1], [0], [0], [1], [0, 0, 1, 1], [], []>} : vector<8x128xf32>, vector<128x128xf32>, vector<8x128xf32> -> vector<8x128xf32>
    %160 = arith.addf %158, %159 : vector<8x128xf32>
    %161 = math.tanh %160 : vector<8x128xf32>
    %c1_130 = arith.constant 1 : index
    %c0_131 = arith.constant 0 : index
    %c0_132 = arith.constant 0 : index
    %162 = vector.load %arg13[%c1_130, %c0_131, %c0_132] : memref<2x8x128xf32, #tpu.memory_space<vmem>>, vector<1x8x128xf32>
    %163 = vector.shape_cast %162 : vector<1x8x128xf32> to vector<8x128xf32>
    %164 = vector.shape_cast %161 : vector<8x128xf32> to vector<1x8x128xf32>
    tpu.vector_store %arg13[%c1_130, %c0_131, %c0_132], %164 {strides = array<i32>} : memref<2x8x128xf32, #tpu.memory_space<vmem>>, vector<1x8x128xf32>,
    %c2_i32_133 = arith.constant 2 : i32
    %c1_134 = arith.constant 1 : index
    %c0_135 = arith.constant 0 : index
    %c0_136 = arith.constant 0 : index
    %165 = vector.load %arg13[%c1_134, %c0_135, %c0_136] : memref<2x8x128xf32, #tpu.memory_space<vmem>>, vector<1x8x128xf32>
    %166 = vector.shape_cast %165 : vector<1x8x128xf32> to vector<8x128xf32>
    %167 = arith.index_cast %c2_i32_133 : i32 to index
    %c0_137 = arith.constant 0 : index
    %c0_138 = arith.constant 0 : index
    %168 = vector.load %arg12[%167, %c0_137, %c0_138] : memref<8x8x128xf32, #tpu.memory_space<vmem>>, vector<1x8x128xf32>
    %169 = vector.shape_cast %168 : vector<1x8x128xf32> to vector<8x128xf32>
    %cst_139 = arith.constant dense<0.000000e+00> : vector<8x128xf32>
    %170 = tpu.matmul %166, %134, %cst_139 {dimension_numbers = #tpu.dot_dimension_numbers<[1], [0], [0], [1], [0, 0, 1, 1], [], []>} : vector<8x128xf32>, vector<128x128xf32>, vector<8x128xf32> -> vector<8x128xf32>
    %171 = arith.addf %169, %170 : vector<8x128xf32>
    %172 = math.tanh %171 : vector<8x128xf32>
    %c1_140 = arith.constant 1 : index
    %c0_141 = arith.constant 0 : index
    %c0_142 = arith.constant 0 : index
    %173 = vector.load %arg13[%c1_140, %c0_141, %c0_142] : memref<2x8x128xf32, #tpu.memory_space<vmem>>, vector<1x8x128xf32>
    %174 = vector.shape_cast %173 : vector<1x8x128xf32> to vector<8x128xf32>
    %175 = vector.shape_cast %172 : vector<8x128xf32> to vector<1x8x128xf32>
    tpu.vector_store %arg13[%c1_140, %c0_141, %c0_142], %175 {strides = array<i32>} : memref<2x8x128xf32, #tpu.memory_space<vmem>>, vector<1x8x128xf32>,
    %c3_i32_143 = arith.constant 3 : i32
    %c1_144 = arith.constant 1 : index
    %c0_145 = arith.constant 0 : index
    %c0_146 = arith.constant 0 : index
    %176 = vector.load %arg13[%c1_144, %c0_145, %c0_146] : memref<2x8x128xf32, #tpu.memory_space<vmem>>, vector<1x8x128xf32>
    %177 = vector.shape_cast %176 : vector<1x8x128xf32> to vector<8x128xf32>
    %178 = arith.index_cast %c3_i32_143 : i32 to index
    %c0_147 = arith.constant 0 : index
    %c0_148 = arith.constant 0 : index
    %179 = vector.load %arg12[%178, %c0_147, %c0_148] : memref<8x8x128xf32, #tpu.memory_space<vmem>>, vector<1x8x128xf32>
    %180 = vector.shape_cast %179 : vector<1x8x128xf32> to vector<8x128xf32>
    %cst_149 = arith.constant dense<0.000000e+00> : vector<8x128xf32>
    %181 = tpu.matmul %177, %134, %cst_149 {dimension_numbers = #tpu.dot_dimension_numbers<[1], [0], [0], [1], [0, 0, 1, 1], [], []>} : vector<8x128xf32>, vector<128x128xf32>, vector<8x128xf32> -> vector<8x128xf32>
    %182 = arith.addf %180, %181 : vector<8x128xf32>
    %183 = math.tanh %182 : vector<8x128xf32>
    %c1_150 = arith.constant 1 : index
    %c0_151 = arith.constant 0 : index
    %c0_152 = arith.constant 0 : index
    %184 = vector.load %arg13[%c1_150, %c0_151, %c0_152] : memref<2x8x128xf32, #tpu.memory_space<vmem>>, vector<1x8x128xf32>
    %185 = vector.shape_cast %184 : vector<1x8x128xf32> to vector<8x128xf32>
    %186 = vector.shape_cast %183 : vector<8x128xf32> to vector<1x8x128xf32>
    tpu.vector_store %arg13[%c1_150, %c0_151, %c0_152], %186 {strides = array<i32>} : memref<2x8x128xf32, #tpu.memory_space<vmem>>, vector<1x8x128xf32>,
    %c4_i32_153 = arith.constant 4 : i32
    %c1_154 = arith.constant 1 : index
    %c0_155 = arith.constant 0 : index
    %c0_156 = arith.constant 0 : index
    %187 = vector.load %arg13[%c1_154, %c0_155, %c0_156] : memref<2x8x128xf32, #tpu.memory_space<vmem>>, vector<1x8x128xf32>
    %188 = vector.shape_cast %187 : vector<1x8x128xf32> to vector<8x128xf32>
    %189 = arith.index_cast %c4_i32_153 : i32 to index
    %c0_157 = arith.constant 0 : index
    %c0_158 = arith.constant 0 : index
    %190 = vector.load %arg12[%189, %c0_157, %c0_158] : memref<8x8x128xf32, #tpu.memory_space<vmem>>, vector<1x8x128xf32>
    %191 = vector.shape_cast %190 : vector<1x8x128xf32> to vector<8x128xf32>
    %cst_159 = arith.constant dense<0.000000e+00> : vector<8x128xf32>
    %192 = tpu.matmul %188, %134, %cst_159 {dimension_numbers = #tpu.dot_dimension_numbers<[1], [0], [0], [1], [0, 0, 1, 1], [], []>} : vector<8x128xf32>, vector<128x128xf32>, vector<8x128xf32> -> vector<8x128xf32>
    %193 = arith.addf %191, %192 : vector<8x128xf32>
    %194 = math.tanh %193 : vector<8x128xf32>
    %c1_160 = arith.constant 1 : index
    %c0_161 = arith.constant 0 : index
    %c0_162 = arith.constant 0 : index
    %195 = vector.load %arg13[%c1_160, %c0_161, %c0_162] : memref<2x8x128xf32, #tpu.memory_space<vmem>>, vector<1x8x128xf32>
    %196 = vector.shape_cast %195 : vector<1x8x128xf32> to vector<8x128xf32>
    %197 = vector.shape_cast %194 : vector<8x128xf32> to vector<1x8x128xf32>
    tpu.vector_store %arg13[%c1_160, %c0_161, %c0_162], %197 {strides = array<i32>} : memref<2x8x128xf32, #tpu.memory_space<vmem>>, vector<1x8x128xf32>,
    %c5_i32_163 = arith.constant 5 : i32
    %c1_164 = arith.constant 1 : index
    %c0_165 = arith.constant 0 : index
    %c0_166 = arith.constant 0 : index
    %198 = vector.load %arg13[%c1_164, %c0_165, %c0_166] : memref<2x8x128xf32, #tpu.memory_space<vmem>>, vector<1x8x128xf32>
    %199 = vector.shape_cast %198 : vector<1x8x128xf32> to vector<8x128xf32>
    %200 = arith.index_cast %c5_i32_163 : i32 to index
    %c0_167 = arith.constant 0 : index
    %c0_168 = arith.constant 0 : index
    %201 = vector.load %arg12[%200, %c0_167, %c0_168] : memref<8x8x128xf32, #tpu.memory_space<vmem>>, vector<1x8x128xf32>
    %202 = vector.shape_cast %201 : vector<1x8x128xf32> to vector<8x128xf32>
    %cst_169 = arith.constant dense<0.000000e+00> : vector<8x128xf32>
    %203 = tpu.matmul %199, %134, %cst_169 {dimension_numbers = #tpu.dot_dimension_numbers<[1], [0], [0], [1], [0, 0, 1, 1], [], []>} : vector<8x128xf32>, vector<128x128xf32>, vector<8x128xf32> -> vector<8x128xf32>
    %204 = arith.addf %202, %203 : vector<8x128xf32>
    %205 = math.tanh %204 : vector<8x128xf32>
    %c1_170 = arith.constant 1 : index
    %c0_171 = arith.constant 0 : index
    %c0_172 = arith.constant 0 : index
    %206 = vector.load %arg13[%c1_170, %c0_171, %c0_172] : memref<2x8x128xf32, #tpu.memory_space<vmem>>, vector<1x8x128xf32>
    %207 = vector.shape_cast %206 : vector<1x8x128xf32> to vector<8x128xf32>
    %208 = vector.shape_cast %205 : vector<8x128xf32> to vector<1x8x128xf32>
    tpu.vector_store %arg13[%c1_170, %c0_171, %c0_172], %208 {strides = array<i32>} : memref<2x8x128xf32, #tpu.memory_space<vmem>>, vector<1x8x128xf32>,
    %c6_i32_173 = arith.constant 6 : i32
    %c1_174 = arith.constant 1 : index
    %c0_175 = arith.constant 0 : index
    %c0_176 = arith.constant 0 : index
    %209 = vector.load %arg13[%c1_174, %c0_175, %c0_176] : memref<2x8x128xf32, #tpu.memory_space<vmem>>, vector<1x8x128xf32>
    %210 = vector.shape_cast %209 : vector<1x8x128xf32> to vector<8x128xf32>
    %211 = arith.index_cast %c6_i32_173 : i32 to index
    %c0_177 = arith.constant 0 : index
    %c0_178 = arith.constant 0 : index
    %212 = vector.load %arg12[%211, %c0_177, %c0_178] : memref<8x8x128xf32, #tpu.memory_space<vmem>>, vector<1x8x128xf32>
    %213 = vector.shape_cast %212 : vector<1x8x128xf32> to vector<8x128xf32>
    %cst_179 = arith.constant dense<0.000000e+00> : vector<8x128xf32>
    %214 = tpu.matmul %210, %134, %cst_179 {dimension_numbers = #tpu.dot_dimension_numbers<[1], [0], [0], [1], [0, 0, 1, 1], [], []>} : vector<8x128xf32>, vector<128x128xf32>, vector<8x128xf32> -> vector<8x128xf32>
    %215 = arith.addf %213, %214 : vector<8x128xf32>
    %216 = math.tanh %215 : vector<8x128xf32>
    %c1_180 = arith.constant 1 : index
    %c0_181 = arith.constant 0 : index
    %c0_182 = arith.constant 0 : index
    %217 = vector.load %arg13[%c1_180, %c0_181, %c0_182] : memref<2x8x128xf32, #tpu.memory_space<vmem>>, vector<1x8x128xf32>
    %218 = vector.shape_cast %217 : vector<1x8x128xf32> to vector<8x128xf32>
    %219 = vector.shape_cast %216 : vector<8x128xf32> to vector<1x8x128xf32>
    tpu.vector_store %arg13[%c1_180, %c0_181, %c0_182], %219 {strides = array<i32>} : memref<2x8x128xf32, #tpu.memory_space<vmem>>, vector<1x8x128xf32>,
    %c7_i32_183 = arith.constant 7 : i32
    %c1_184 = arith.constant 1 : index
    %c0_185 = arith.constant 0 : index
    %c0_186 = arith.constant 0 : index
    %220 = vector.load %arg13[%c1_184, %c0_185, %c0_186] : memref<2x8x128xf32, #tpu.memory_space<vmem>>, vector<1x8x128xf32>
    %221 = vector.shape_cast %220 : vector<1x8x128xf32> to vector<8x128xf32>
    %222 = arith.index_cast %c7_i32_183 : i32 to index
    %c0_187 = arith.constant 0 : index
    %c0_188 = arith.constant 0 : index
    %223 = vector.load %arg12[%222, %c0_187, %c0_188] : memref<8x8x128xf32, #tpu.memory_space<vmem>>, vector<1x8x128xf32>
    %224 = vector.shape_cast %223 : vector<1x8x128xf32> to vector<8x128xf32>
    %cst_189 = arith.constant dense<0.000000e+00> : vector<8x128xf32>
    %225 = tpu.matmul %221, %134, %cst_189 {dimension_numbers = #tpu.dot_dimension_numbers<[1], [0], [0], [1], [0, 0, 1, 1], [], []>} : vector<8x128xf32>, vector<128x128xf32>, vector<8x128xf32> -> vector<8x128xf32>
    %226 = arith.addf %224, %225 : vector<8x128xf32>
    %227 = math.tanh %226 : vector<8x128xf32>
    %c1_190 = arith.constant 1 : index
    %c0_191 = arith.constant 0 : index
    %c0_192 = arith.constant 0 : index
    %228 = vector.load %arg13[%c1_190, %c0_191, %c0_192] : memref<2x8x128xf32, #tpu.memory_space<vmem>>, vector<1x8x128xf32>
    %229 = vector.shape_cast %228 : vector<1x8x128xf32> to vector<8x128xf32>
    %230 = vector.shape_cast %227 : vector<8x128xf32> to vector<1x8x128xf32>
    tpu.vector_store %arg13[%c1_190, %c0_191, %c0_192], %230 {strides = array<i32>} : memref<2x8x128xf32, #tpu.memory_space<vmem>>, vector<1x8x128xf32>,
    %c8_i32_193 = arith.constant 8 : i32
    %c0_i32_194 = arith.constant 0 : i32
    %231 = arith.cmpi eq, %arg1, %c0_i32_194 : i32
    %232 = arith.extui %231 : i1 to i32
    %c0_i32_195 = arith.constant 0 : i32
    %233 = arith.cmpi ne, %232, %c0_i32_195 : i32
    scf.if %233 {
      %c1_196 = arith.constant 1 : index
      %c0_197 = arith.constant 0 : index
      %c0_198 = arith.constant 0 : index
      %234 = vector.load %arg13[%c1_196, %c0_197, %c0_198] : memref<2x8x128xf32, #tpu.memory_space<vmem>>, vector<1x8x128xf32>
      %235 = vector.shape_cast %234 : vector<1x8x128xf32> to vector<8x128xf32>
      %c0_199 = arith.constant 0 : index
      %c0_200 = arith.constant 0 : index
      %236 = vector.load %arg9[%c0_199, %c0_200] : memref<128x128xf32, #tpu.memory_space<vmem>>, vector<128x128xf32>
      %cst_201 = arith.constant dense<0.000000e+00> : vector<8x128xf32>
      %237 = tpu.matmul %235, %236, %cst_201 {dimension_numbers = #tpu.dot_dimension_numbers<[1], [0], [0], [1], [0, 0, 1, 1], [], []>} : vector<8x128xf32>, vector<128x128xf32>, vector<8x128xf32> -> vector<8x128xf32>
      %c0_202 = arith.constant 0 : index
      %c0_203 = arith.constant 0 : index
      %238 = vector.load %arg10[%c0_202, %c0_203] : memref<1x128xf32, #tpu.memory_space<vmem>>, vector<1x128xf32>
      %239 = vector.broadcast %238 : vector<1x128xf32> to vector<8x128xf32>
      %240 = arith.addf %237, %239 : vector<8x128xf32>
      %c0_204 = arith.constant 0 : index
      %c0_205 = arith.constant 0 : index
      %241 = vector.load %arg11[%c0_204, %c0_205] : memref<8x128xf32, #tpu.memory_space<vmem>>, vector<8x128xf32>
      tpu.vector_store %arg11[%c0_204, %c0_205], %240 {strides = array<i32>} : memref<8x128xf32, #tpu.memory_space<vmem>>, vector<8x128xf32>,
    } else {
    }
    return
  }
  func.func @transform_0(%arg0: i32, %arg1: i32) -> (i32, i32, i32) {
    %c0_i32 = arith.constant 0 : i32
    %c0_i32_0 = arith.constant 0 : i32
    return %arg1, %arg0, %c0_i32 : i32, i32, i32
  }
  func.func @transform_1(%arg0: i32, %arg1: i32) -> (i32, i32) {
    %c0_i32 = arith.constant 0 : i32
    %c0_i32_0 = arith.constant 0 : i32
    %c0_i32_1 = arith.constant 0 : i32
    return %c0_i32, %c0_i32_0 : i32, i32
  }
  func.func @transform_2(%arg0: i32, %arg1: i32) -> (i32, i32) {
    %c0_i32 = arith.constant 0 : i32
    %c0_i32_0 = arith.constant 0 : i32
    %c0_i32_1 = arith.constant 0 : i32
    return %c0_i32, %c0_i32_0 : i32, i32
  }
  func.func @transform_3(%arg0: i32, %arg1: i32) -> (i32, i32) {
    %c0_i32 = arith.constant 0 : i32
    %c0_i32_0 = arith.constant 0 : i32
    %c0_i32_1 = arith.constant 0 : i32
    return %c0_i32, %c0_i32_0 : i32, i32
  }
  func.func @transform_4(%arg0: i32, %arg1: i32) -> (i32, i32) {
    %c0_i32 = arith.constant 0 : i32
    %c0_i32_0 = arith.constant 0 : i32
    %c0_i32_1 = arith.constant 0 : i32
    return %c0_i32, %c0_i32_0 : i32, i32
  }
  func.func @transform_5(%arg0: i32, %arg1: i32) -> (i32, i32) {
    %c0_i32 = arith.constant 0 : i32
    %c0_i32_0 = arith.constant 0 : i32
    %c0_i32_1 = arith.constant 0 : i32
    return %c0_i32, %c0_i32_0 : i32, i32
  }
  func.func @transform_6(%arg0: i32, %arg1: i32) -> (i32, i32) {
    %c0_i32 = arith.constant 0 : i32
    %c0_i32_0 = arith.constant 0 : i32
    %c0_i32_1 = arith.constant 0 : i32
    return %c0_i32, %c0_i32_0 : i32, i32
  }
  func.func @transform_7(%arg0: i32, %arg1: i32) -> (i32, i32) {
    %c0_i32 = arith.constant 0 : i32
    %c0_i32_0 = arith.constant 0 : i32
    %c0_i32_1 = arith.constant 0 : i32
    return %c0_i32, %c0_i32_0 : i32, i32
  }
  func.func @transform_8(%arg0: i32, %arg1: i32) -> (i32, i32) {
    %c0_i32 = arith.constant 0 : i32
    %c0_i32_0 = arith.constant 0 : i32
    %c0_i32_1 = arith.constant 0 : i32
    return %c0_i32, %c0_i32_0 : i32, i32
  }
  func.func @transform_9(%arg0: i32, %arg1: i32) -> (i32, i32) {
    %c0_i32 = arith.constant 0 : i32
    %c0_i32_0 = arith.constant 0 : i32
    return %arg0, %c0_i32 : i32, i32
  }
}

</mosaic_0001>

<bundles_post_ra>
// kernel: rnn_forward.1
= control target key start
LH: loop header
LB: loop body
LE: loop exit
PB: predicated region body
PF: predicated region fallthrough
CT: control target
= control target key end

     0   :  { %v725_v33 = vmov 0.0   ;;  %s1406_s1 = inlined_call_operand.vmem [shape: f32[128,128], index: 1, kind: input, shape index: {}]   ;;  %s1407_s2 = inlined_call_operand.vmem [shape: f32[128,128], index: 2, kind: input, shape index: {}]   ;;  %s1408_s3 = inlined_call_operand.vmem [shape: f32[1,128], index: 3, kind: input, shape index: {}]   ;;  %s1409_s0 = inlined_call_operand.vmem [shape: f32[8,8,128], index: 0, kind: input, shape index: {}]   ;;  %s1410_s4 = inlined_call_operand.vmem [shape: f32[128,128], index: 4, kind: input, shape index: {}]   ;;  %s1411_s5 = inlined_call_operand.vmem [shape: f32[128,128], index: 5, kind: input, shape index: {}]   ;;  %s1412_s6 = inlined_call_operand.vmem [shape: f32[1,128], index: 6, kind: input, shape index: {}]   ;;  %s1413_s7 = inlined_call_operand.vmem [shape: f32[128,128], index: 7, kind: input, shape index: {}]   ;;  %s1414_s8 = inlined_call_operand.vmem [shape: f32[1,128], index: 8, kind: input, shape index: {}]   ;;  %s1415_s9 = inlined_call_operand.vmem [shape: f32[8,128], index: 9, kind: output, shape index: {}]  }
   0x1   :  { %v53_v0 = vld [vmem:[%s1406_s1 + $0x78] sm:$0xff]  ;;  %v52_v1 = vld [vmem:[%s1406_s1 + $0x70] sm:$0xff]  ;;  %v51_v4 = vld [vmem:[%s1406_s1 + $0x68] sm:$0xff] }
   0x2   :  { %v785_v2 = vld [vmem:[%s1407_s2 + $0x78] sm:$0xff]  ;;  %82 = vmatpush.msra.mxu0 %v53_v0  ;;  %v791_v3 = vld [vmem:[%s1407_s2 + $0x70] sm:$0xff]  ;;  %v799_v5 = vld [vmem:[%s1407_s2 + $0x68] sm:$0xff] }
   0x3   :  { %133 = vmatpush.msra.mxu1 %v785_v2  ;;  %160 = vmatpush.msra.mxu2 %v785_v2  ;;  %v50_v6 = vld [vmem:[%s1406_s1 + $0x60] sm:$0xff]  ;;  %v49_v8 = vld [vmem:[%s1406_s1 + $0x58] sm:$0xff]  ;;  %v48_v10 = vld [vmem:[%s1406_s1 + $0x50] sm:$0xff] }
   0x4   :  { %187 = vmatpush.msra.mxu3 %v785_v2  ;;  %83 = vmatpush.msra.mxu0 %v52_v1  ;;  %v810_v7 = vld [vmem:[%s1407_s2 + $0x60] sm:$0xff]  ;;  %v821_v9 = vld [vmem:[%s1407_s2 + $0x58] sm:$0xff]  ;;  %v832_v11 = vld [vmem:[%s1407_s2 + $0x50] sm:$0xff] }
   0x5   :  { %134 = vmatpush.msra.mxu1 %v791_v3  ;;  %161 = vmatpush.msra.mxu2 %v791_v3  ;;  %v47_v12 = vld [vmem:[%s1406_s1 + $0x48] sm:$0xff]  ;;  %v46_v14 = vld [vmem:[%s1406_s1 + $0x40] sm:$0xff]  ;;  %v45_v16 = vld [vmem:[%s1406_s1 + $0x38] sm:$0xff] }
   0x6   :  { %188 = vmatpush.msra.mxu3 %v791_v3  ;;  %84 = vmatpush.msra.mxu0 %v51_v4  ;;  %v843_v13 = vld [vmem:[%s1407_s2 + $0x48] sm:$0xff]  ;;  %v854_v15 = vld [vmem:[%s1407_s2 + $0x40] sm:$0xff]  ;;  %v865_v17 = vld [vmem:[%s1407_s2 + $0x38] sm:$0xff] }
   0x7   :  { %135 = vmatpush.msra.mxu1 %v799_v5  ;;  %162 = vmatpush.msra.mxu2 %v799_v5  ;;  %v44_v18 = vld [vmem:[%s1406_s1 + $0x30] sm:$0xff]  ;;  %v43_v20 = vld [vmem:[%s1406_s1 + $0x28] sm:$0xff]  ;;  %v42_v22 = vld [vmem:[%s1406_s1 + $0x20] sm:$0xff] }
   0x8   :  { %189 = vmatpush.msra.mxu3 %v799_v5  ;;  %85 = vmatpush.msra.mxu0 %v50_v6  ;;  %v876_v19 = vld [vmem:[%s1407_s2 + $0x30] sm:$0xff]  ;;  %v887_v21 = vld [vmem:[%s1407_s2 + $0x28] sm:$0xff]  ;;  %v898_v23 = vld [vmem:[%s1407_s2 + $0x20] sm:$0xff] }
   0x9   :  { %136 = vmatpush.msra.mxu1 %v810_v7  ;;  %163 = vmatpush.msra.mxu2 %v810_v7  ;;  %v41_v24 = vld [vmem:[%s1406_s1 + $0x18] sm:$0xff]  ;;  %v40_v26 = vld [vmem:[%s1406_s1 + $0x10] sm:$0xff]  ;;  %v39_v28 = vld [vmem:[%s1406_s1 + $0x8] sm:$0xff] }
   0xa   :  { %190 = vmatpush.msra.mxu3 %v810_v7  ;;  %86 = vmatpush.msra.mxu0 %v49_v8  ;;  %v909_v25 = vld [vmem:[%s1407_s2 + $0x18] sm:$0xff]  ;;  %v920_v27 = vld [vmem:[%s1407_s2 + $0x10] sm:$0xff]  ;;  %v931_v29 = vld [vmem:[%s1407_s2 + $0x8] sm:$0xff] }
   0xb   :  { %137 = vmatpush.msra.mxu1 %v821_v9  ;;  %164 = vmatpush.msra.mxu2 %v821_v9  ;;  %v38_v30 = vld [vmem:[%s1406_s1] sm:$0xff]  ;;  %v72_v34 = vld [vmem:[%s1409_s0 + $0x8] sm:$0xff]  ;;  %v73_v41 = vld [vmem:[%s1409_s0 + $0x10] sm:$0xff] }
   0xc   :  { %191 = vmatpush.msra.mxu3 %v821_v9  ;;  %87 = vmatpush.msra.mxu0 %v48_v10  ;;  %v942_v31 = vld [vmem:[%s1407_s2] sm:$0xff]  ;;  %v74_v47 = vld [vmem:[%s1409_s0 + $0x18] sm:$0xff]  ;;  %v360_v49 = vld [vmem:[%s1410_s4 + $0x70] sm:$0xff] }
   0xd   :  { %138 = vmatpush.msra.mxu1 %v832_v11  ;;  %165 = vmatpush.msra.mxu2 %v832_v11  ;;  %v71_v32 = vld [vmem:[%s1409_s0] sm:$0xff]  ;;  %v361_v48 = vld [vmem:[%s1410_s4 + $0x78] sm:$0xff]  ;;  %v359_v50 = vld [vmem:[%s1410_s4 + $0x68] sm:$0xff] }
   0xe   :  { %192 = vmatpush.msra.mxu3 %v832_v11  ;;  %88 = vmatpush.msra.mxu0 %v47_v12  ;;  %v1042_v35 = vld [vmem:[%s1408_s3] ss:$0 sm:$0xff]  ;;  %v357_v52 = vld [vmem:[%s1410_s4 + $0x58] sm:$0xff]  ;;  %v356_v53 = vld [vmem:[%s1410_s4 + $0x50] sm:$0xff] }
   0xf   :  { %139 = vmatpush.msra.mxu1 %v843_v13  ;;  %166 = vmatpush.msra.mxu2 %v843_v13  ;;  %v358_v51 = vld [vmem:[%s1410_s4 + $0x60] sm:$0xff]  ;;  %v355_v59 = vld [vmem:[%s1410_s4 + $0x48] sm:$0xff]  ;;  %v353_v61 = vld [vmem:[%s1410_s4 + $0x38] sm:$0xff] }
  0x10   :  { %193 = vmatpush.msra.mxu3 %v843_v13  ;;  %89 = vmatpush.msra.mxu0 %v46_v14  ;;  %v354_v60 = vld [vmem:[%s1410_s4 + $0x40] sm:$0xff]  ;;  %v352_v62 = vld [vmem:[%s1410_s4 + $0x30] sm:$0xff]  ;;  %v351_v63 = vld [vmem:[%s1410_s4 + $0x28] sm:$0xff] }
  0x11   :  { %140 = vmatpush.msra.mxu1 %v854_v15  ;;  %167 = vmatpush.msra.mxu2 %v854_v15  ;;  %v350_v0 = vld [vmem:[%s1410_s4 + $0x20] sm:$0xff]  ;;  %v349_v1 = vld [vmem:[%s1410_s4 + $0x18] sm:$0xff]  ;;  %v347_v4 = vld [vmem:[%s1410_s4 + $0x8] sm:$0xff] }
  0x12   :  { %194 = vmatpush.msra.mxu3 %v854_v15  ;;  %90 = vmatpush.msra.mxu0 %v45_v16  ;;  %v1122_v12 = vld [vmem:[%s1411_s5 + $0x70] sm:$0xff]  ;;  %v1138_v14 = vld [vmem:[%s1411_s5 + $0x60] sm:$0xff] }
  0x13   :  { %141 = vmatpush.msra.mxu1 %v865_v17  ;;  %168 = vmatpush.msra.mxu2 %v865_v17  ;;  %v1157_v16 = vld [vmem:[%s1411_s5 + $0x50] sm:$0xff] }
  0x14   :  { %195 = vmatpush.msra.mxu3 %v865_v17  ;;  %91 = vmatpush.msra.mxu0 %v44_v18  ;;  %v1183_v18 = vld [vmem:[%s1411_s5 + $0x40] sm:$0xff] }
  0x15   :  { %142 = vmatpush.msra.mxu1 %v876_v19  ;;  %169 = vmatpush.msra.mxu2 %v876_v19 }
  0x16   :  { %196 = vmatpush.msra.mxu3 %v876_v19  ;;  %92 = vmatpush.msra.mxu0 %v43_v20  ;;  %v1198_v20 = vld [vmem:[%s1411_s5 + $0x30] sm:$0xff] }
  0x17   :  { %143 = vmatpush.msra.mxu1 %v887_v21  ;;  %170 = vmatpush.msra.mxu2 %v887_v21 }
  0x18   :  { %197 = vmatpush.msra.mxu3 %v887_v21  ;;  %93 = vmatpush.msra.mxu0 %v42_v22  ;;  %v1217_v22 = vld [vmem:[%s1411_s5 + $0x20] sm:$0xff] }
  0x19   :  { %144 = vmatpush.msra.mxu1 %v898_v23  ;;  %171 = vmatpush.msra.mxu2 %v898_v23 }
  0x1a   :  { %198 = vmatpush.msra.mxu3 %v898_v23  ;;  %94 = vmatpush.msra.mxu0 %v41_v24  ;;  %v1231_v24 = vld [vmem:[%s1411_s5 + $0x10] sm:$0xff] }
  0x1b   :  { %145 = vmatpush.msra.mxu1 %v909_v25  ;;  %172 = vmatpush.msra.mxu2 %v909_v25 }
  0x1c   :  { %199 = vmatpush.msra.mxu3 %v909_v25  ;;  %95 = vmatpush.msra.mxu0 %v40_v26  ;;  %v1242_v26 = vld [vmem:[%s1411_s5 + $0x8] sm:$0xff] }
  0x1d   :  { %146 = vmatpush.msra.mxu1 %v920_v27  ;;  %173 = vmatpush.msra.mxu2 %v920_v27 }
  0x1e   :  { %200 = vmatpush.msra.mxu3 %v920_v27  ;;  %96 = vmatpush.msra.mxu0 %v39_v28 }
  0x1f   :  { %147 = vmatpush.msra.mxu1 %v931_v29  ;;  %174 = vmatpush.msra.mxu2 %v931_v29 }
  0x20   :  { %201 = vmatpush.msra.mxu3 %v931_v29  ;;  %97 = vmatpush.msra.mxu0 %v38_v30 }
  0x21   :  { %148 = vmatpush.msra.mxu1 %v942_v31  ;;  %98 = vmatmul.f32.vlgmr.msra.gmra.mxu0 %v71_v32  ;;  %v77_v32 = vld [vmem:[%s1409_s0 + $0x30] sm:$0xff] }
  0x22   :  { %149 = vmatmul.f32.vlgmr.msra.gmra.mxu1 %v725_v33  ;;  %175 = vmatpush.msra.mxu2 %v942_v31 }
  0x23   :  { %202 = vmatpush.msra.mxu3 %v942_v31  ;;  %214 = vmatpush.msrb.mxu1 %v785_v2 }
  0x24   :  { %241 = vmatpush.msrb.mxu2 %v785_v2  ;;  %295 = vmatpush.msrb.mxu0 %v785_v2 }
  0x25   :  { %268 = vmatpush.msrb.mxu3 %v785_v2  ;;  %215 = vmatpush.msrb.mxu1 %v791_v3 }
  0x26   :  { %242 = vmatpush.msrb.mxu2 %v791_v3  ;;  %296 = vmatpush.msrb.mxu0 %v791_v3 }
  0x27   :  { %269 = vmatpush.msrb.mxu3 %v791_v3  ;;  %216 = vmatpush.msrb.mxu1 %v799_v5 }
  0x28   :  { %243 = vmatpush.msrb.mxu2 %v799_v5  ;;  %297 = vmatpush.msrb.mxu0 %v799_v5 }
  0x29   :  { %270 = vmatpush.msrb.mxu3 %v799_v5  ;;  %217 = vmatpush.msrb.mxu1 %v810_v7 }
  0x2a   :  { %244 = vmatpush.msrb.mxu2 %v810_v7  ;;  %298 = vmatpush.msrb.mxu0 %v810_v7 }
  0x2b   :  { %271 = vmatpush.msrb.mxu3 %v810_v7  ;;  %218 = vmatpush.msrb.mxu1 %v821_v9 }
  0x2c   :  { %245 = vmatpush.msrb.mxu2 %v821_v9  ;;  %299 = vmatpush.msrb.mxu0 %v821_v9 }
  0x2d   :  { %272 = vmatpush.msrb.mxu3 %v821_v9  ;;  %219 = vmatpush.msrb.mxu1 %v832_v11 }
  0x2e   :  { %246 = vmatpush.msrb.mxu2 %v832_v11  ;;  %300 = vmatpush.msrb.mxu0 %v832_v11 }
  0x2f   :  { %273 = vmatpush.msrb.mxu3 %v832_v11  ;;  %220 = vmatpush.msrb.mxu1 %v843_v13 }
  0x30   :  { %247 = vmatpush.msrb.mxu2 %v843_v13  ;;  %301 = vmatpush.msrb.mxu0 %v843_v13 }
  0x31   :  { %274 = vmatpush.msrb.mxu3 %v843_v13  ;;  %221 = vmatpush.msrb.mxu1 %v854_v15 }
  0x32   :  { %248 = vmatpush.msrb.mxu2 %v854_v15  ;;  %302 = vmatpush.msrb.mxu0 %v854_v15 }
  0x33   :  { %275 = vmatpush.msrb.mxu3 %v854_v15  ;;  %222 = vmatpush.msrb.mxu1 %v865_v17 }
  0x34   :  { %249 = vmatpush.msrb.mxu2 %v865_v17  ;;  %303 = vmatpush.msrb.mxu0 %v865_v17 }
  0x35   :  { %276 = vmatpush.msrb.mxu3 %v865_v17  ;;  %223 = vmatpush.msrb.mxu1 %v876_v19 }
  0x36   :  { %250 = vmatpush.msrb.mxu2 %v876_v19  ;;  %304 = vmatpush.msrb.mxu0 %v876_v19 }
  0x37   :  { %277 = vmatpush.msrb.mxu3 %v876_v19  ;;  %224 = vmatpush.msrb.mxu1 %v887_v21 }
  0x38   :  { %251 = vmatpush.msrb.mxu2 %v887_v21  ;;  %305 = vmatpush.msrb.mxu0 %v887_v21 }
  0x39   :  { %278 = vmatpush.msrb.mxu3 %v887_v21  ;;  %225 = vmatpush.msrb.mxu1 %v898_v23 }
  0x3a   :  { %252 = vmatpush.msrb.mxu2 %v898_v23  ;;  %306 = vmatpush.msrb.mxu0 %v898_v23 }
  0x3b   :  { %279 = vmatpush.msrb.mxu3 %v898_v23  ;;  %226 = vmatpush.msrb.mxu1 %v909_v25 }
  0x3c   :  { %253 = vmatpush.msrb.mxu2 %v909_v25  ;;  %307 = vmatpush.msrb.mxu0 %v909_v25 }
  0x3d   :  { %280 = vmatpush.msrb.mxu3 %v909_v25  ;;  %227 = vmatpush.msrb.mxu1 %v920_v27 }
  0x3e   :  { %254 = vmatpush.msrb.mxu2 %v920_v27  ;;  %308 = vmatpush.msrb.mxu0 %v920_v27 }
  0x3f   :  { %281 = vmatpush.msrb.mxu3 %v920_v27  ;;  %228 = vmatpush.msrb.mxu1 %v931_v29 }
  0x40   :  { %255 = vmatpush.msrb.mxu2 %v931_v29  ;;  %309 = vmatpush.msrb.mxu0 %v931_v29 }
  0x41   :  { %282 = vmatpush.msrb.mxu3 %v931_v29  ;;  %229 = vmatpush.msrb.mxu1 %v942_v31 }
  0x42   :  { %256 = vmatpush.msrb.mxu2 %v942_v31  ;;  %310 = vmatpush.msrb.mxu0 %v942_v31 }
  0x43   :  { %283 = vmatpush.msrb.mxu3 %v942_v31  ;;  %322 = vmatpush.msra.mxu1 %v785_v2  ;;  %v348_v2 = vld [vmem:[%s1410_s4 + $0x10] sm:$0xff] }
  0x44   :  { %101 = vmatmul.f32.gmra.mxu0 %v72_v34 }
  0x45   :  { %323 = vmatpush.msra.mxu1 %v791_v3  ;;  %v75_v3 = vld [vmem:[%s1409_s0 + $0x20] sm:$0xff] }
  0x47   :  { %324 = vmatpush.msra.mxu1 %v799_v5  ;;  %v346_v5 = vld [vmem:[%s1410_s4] sm:$0xff] }
  0x49   :  { %325 = vmatpush.msra.mxu1 %v810_v7 }
  0x4b   :  { %326 = vmatpush.msra.mxu1 %v821_v9 }
  0x4c   :  { %104 = vmatmul.f32.gmra.mxu0 %v73_v41 }
  0x4d   :  { %327 = vmatpush.msra.mxu1 %v832_v11  ;;  %v1117_v11 = vld [vmem:[%s1411_s5 + $0x78] sm:$0xff] }
  0x4e   :  { %467 = vmatpush.msra.mxu0 %v1117_v11 }
  0x4f   :  { %328 = vmatpush.msra.mxu1 %v843_v13  ;;  %v1129_v13 = vld [vmem:[%s1411_s5 + $0x68] sm:$0xff] }
  0x50   :  { %468 = vmatpush.msra.mxu0 %v1122_v12 }
  0x51   :  { %329 = vmatpush.msra.mxu1 %v854_v15  ;;  %v1147_v15 = vld [vmem:[%s1411_s5 + $0x58] sm:$0xff] }
  0x52   :  { %469 = vmatpush.msra.mxu0 %v1129_v13 }
  0x53   :  { %330 = vmatpush.msra.mxu1 %v865_v17  ;;  %v1174_v17 = vld [vmem:[%s1411_s5 + $0x48] sm:$0xff] }
  0x54   :  { %107 = vmatmul.f32.gmra.mxu0 %v74_v47 }
  0x55   :  { %331 = vmatpush.msra.mxu1 %v876_v19  ;;  %470 = vmatpush.msra.mxu0 %v1138_v14  ;;  %v1190_v19 = vld [vmem:[%s1411_s5 + $0x38] sm:$0xff] }
  0x57   :  { %332 = vmatpush.msra.mxu1 %v887_v21  ;;  %471 = vmatpush.msra.mxu0 %v1147_v15  ;;  %v1204_v21 = vld [vmem:[%s1411_s5 + $0x28] sm:$0xff] }
  0x59   :  { %333 = vmatpush.msra.mxu1 %v898_v23  ;;  %472 = vmatpush.msra.mxu0 %v1157_v16  ;;  %v1226_v23 = vld [vmem:[%s1411_s5 + $0x18] sm:$0xff] }
  0x5b   :  { %334 = vmatpush.msra.mxu1 %v909_v25  ;;  %473 = vmatpush.msra.mxu0 %v1174_v17  ;;  %v76_v25 = vld [vmem:[%s1409_s0 + $0x28] sm:$0xff] }
  0x5c   :  { %110 = vmatmul.f32.gmra.mxu0 %v75_v3 }
  0x5d   :  { %335 = vmatpush.msra.mxu1 %v920_v27  ;;  %474 = vmatpush.msra.mxu0 %v1183_v18  ;;  %v1255_v27 = vld [vmem:[%s1411_s5] sm:$0xff] }
  0x5f   :  { %336 = vmatpush.msra.mxu1 %v931_v29  ;;  %475 = vmatpush.msra.mxu0 %v1190_v19 }
  0x61   :  { %337 = vmatpush.msra.mxu1 %v942_v31  ;;  %476 = vmatpush.msra.mxu0 %v1198_v20 }
  0x63   :  { %477 = vmatpush.msra.mxu0 %v1204_v21 }
  0x64   :  { %113 = vmatmul.f32.gmra.mxu0 %v76_v25  ;;  %v652_v25 = vld [vmem:[%s1413_s7 + $0x40] sm:$0xff] }
  0x65   :  { %478 = vmatpush.msra.mxu0 %v1217_v22 }
  0x67   :  { %479 = vmatpush.msra.mxu0 %v1226_v23 }
  0x69   :  { %480 = vmatpush.msra.mxu0 %v1231_v24 }
  0x6b   :  { %481 = vmatpush.msra.mxu0 %v1242_v26 }
  0x6c   :  { %116 = vmatmul.f32.gmra.mxu0 %v77_v32 }
  0x6d   :  { %482 = vmatpush.msra.mxu0 %v1255_v27 }
  0x9e   :  { %v99_v36 = vpop.f32.mrf.mxu0 }
  0x9f   :  { %v150_v37 = vpop.f32.mrf.mxu1  ;;  %v100_v38 = vadd.f32 %v1042_v35, %v99_v36 }
  0xa1   :  { %v153_v39 = vadd.f32 %v150_v37, %v100_v38 }
  0xa3   :  { %693 = vtanh.f32 %v153_v39 }
  0xa9   :  { %v1045_v40 = vpop.eup %693 }
  0xaa   :  { %176 = vmatmul.f32.vlgmr.msra.gmra.mxu2 %v1045_v40 }
  0xab   :  { %390 = vmatpush.msra.mxu2 %v361_v48 }
  0xad   :  { %391 = vmatpush.msra.mxu2 %v360_v49 }
  0xaf   :  { %392 = vmatpush.msra.mxu2 %v359_v50 }
  0xb1   :  { %393 = vmatpush.msra.mxu2 %v358_v51 }
  0xb3   :  { %394 = vmatpush.msra.mxu2 %v357_v52 }
  0xb5   :  { %395 = vmatpush.msra.mxu2 %v356_v53 }
  0xb7   :  { %396 = vmatpush.msra.mxu2 %v355_v59 }
  0xb9   :  { %397 = vmatpush.msra.mxu2 %v354_v60 }
  0xbb   :  { %398 = vmatpush.msra.mxu2 %v353_v61 }
  0xbd   :  { %399 = vmatpush.msra.mxu2 %v352_v62 }
  0xbf   :  { %400 = vmatpush.msra.mxu2 %v351_v63 }
  0xc1   :  { %v102_v42 = vpop.f32.mrf.mxu0  ;;  %401 = vmatpush.msra.mxu2 %v350_v0 }
  0xc2   :  { %v103_v43 = vadd.f32 %v1042_v35, %v102_v42 }
  0xc3   :  { %402 = vmatpush.msra.mxu2 %v349_v1 }
  0xc5   :  { %403 = vmatpush.msra.mxu2 %v348_v2 }
  0xc7   :  { %404 = vmatpush.msra.mxu2 %v347_v4 }
  0xc9   :  { %v105_v54 = vpop.f32.mrf.mxu0  ;;  %405 = vmatpush.msra.mxu2 %v346_v5 }
  0xca   :  { %v106_v55 = vadd.f32 %v1042_v35, %v105_v54 }
  0xd1   :  { %v108_v6 = vpop.f32.mrf.mxu0 }
  0xd2   :  { %v109_v7 = vadd.f32 %v1042_v35, %v108_v6 }
  0xd9   :  { %v111_v28 = vpop.f32.mrf.mxu0 }
  0xda   :  { %v112_v29 = vadd.f32 %v1042_v35, %v111_v28  ;;  %v650_v28 = vld [vmem:[%s1413_s7 + $0x30] sm:$0xff] }
  0xe1   :  { %v114_v36 = vpop.f32.mrf.mxu0 }
  0xe2   :  { %v115_v37 = vadd.f32 %v1042_v35, %v114_v36  ;;  %v647_v36 = vld [vmem:[%s1413_s7 + $0x18] sm:$0xff] }
  0xe9   :  { %v117_v47 = vpop.f32.mrf.mxu0 }
  0xea   :  { %v118_v49 = vadd.f32 %v1042_v35, %v117_v47 }
 0x12d   :  { %v177_v44 = vpop.f32.mrf.mxu2 }
 0x12e   :  { %v180_v45 = vadd.f32 %v177_v44, %v103_v43 }
 0x130   :  { %695 = vtanh.f32 %v180_v45 }
 0x136   :  { %v1052_v46 = vpop.eup %695 }
 0x137   :  { %203 = vmatmul.f32.vlgmr.msra.gmra.mxu3 %v1052_v46 }
 0x138   :  { %442 = vmatpush.msra.mxu3 %v1117_v11 }
 0x13a   :  { %443 = vmatpush.msra.mxu3 %v1122_v12 }
 0x13c   :  { %444 = vmatpush.msra.mxu3 %v1129_v13 }
 0x13e   :  { %445 = vmatpush.msra.mxu3 %v1138_v14 }
 0x140   :  { %446 = vmatpush.msra.mxu3 %v1147_v15 }
 0x142   :  { %447 = vmatpush.msra.mxu3 %v1157_v16 }
 0x144   :  { %448 = vmatpush.msra.mxu3 %v1174_v17 }
 0x146   :  { %449 = vmatpush.msra.mxu3 %v1183_v18 }
 0x148   :  { %450 = vmatpush.msra.mxu3 %v1190_v19 }
 0x14a   :  { %451 = vmatpush.msra.mxu3 %v1198_v20 }
 0x14c   :  { %452 = vmatpush.msra.mxu3 %v1204_v21 }
 0x14e   :  { %453 = vmatpush.msra.mxu3 %v1217_v22 }
 0x150   :  { %454 = vmatpush.msra.mxu3 %v1226_v23 }
 0x152   :  { %455 = vmatpush.msra.mxu3 %v1231_v24 }
 0x154   :  { %456 = vmatpush.msra.mxu3 %v1242_v26 }
 0x156   :  { %457 = vmatpush.msra.mxu3 %v1255_v27 }
 0x1ba   :  { %v204_v56 = vpop.f32.mrf.mxu3 }
 0x1bb   :  { %v207_v57 = vadd.f32 %v204_v56, %v106_v55 }
 0x1bd   :  { %697 = vtanh.f32 %v207_v57 }
 0x1c3   :  { %v1077_v58 = vpop.eup %697 }
 0x1c4   :  { %230 = vmatmul.f32.vlgmr.msrb.gmra.mxu1 %v1077_v58 }
 0x1c5   :  { %492 = vmatpush.msrb.mxu1 %v1117_v11 }
 0x1c7   :  { %493 = vmatpush.msrb.mxu1 %v1122_v12 }
 0x1c9   :  { %494 = vmatpush.msrb.mxu1 %v1129_v13 }
 0x1cb   :  { %495 = vmatpush.msrb.mxu1 %v1138_v14 }
 0x1cd   :  { %496 = vmatpush.msrb.mxu1 %v1147_v15 }
 0x1cf   :  { %497 = vmatpush.msrb.mxu1 %v1157_v16 }
 0x1d1   :  { %498 = vmatpush.msrb.mxu1 %v1174_v17 }
 0x1d3   :  { %499 = vmatpush.msrb.mxu1 %v1183_v18 }
 0x1d5   :  { %500 = vmatpush.msrb.mxu1 %v1190_v19 }
 0x1d7   :  { %501 = vmatpush.msrb.mxu1 %v1198_v20 }
 0x1d9   :  { %502 = vmatpush.msrb.mxu1 %v1204_v21 }
 0x1db   :  { %503 = vmatpush.msrb.mxu1 %v1217_v22 }
 0x1dd   :  { %504 = vmatpush.msrb.mxu1 %v1226_v23 }
 0x1df   :  { %505 = vmatpush.msrb.mxu1 %v1231_v24 }
 0x1e1   :  { %506 = vmatpush.msrb.mxu1 %v1242_v26 }
 0x1e3   :  { %507 = vmatpush.msrb.mxu1 %v1255_v27 }
 0x241   :  { %v231_v8 = vpop.f32.mrf.mxu1 }
 0x242   :  { %v234_v9 = vadd.f32 %v231_v8, %v109_v7 }
 0x244   :  { %699 = vtanh.f32 %v234_v9 }
 0x24a   :  { %v700_v10 = vpop.eup %699 }
 0x24b   :  { %257 = vmatmul.f32.vlgmr.msrb.gmra.mxu2 %v700_v10 }
 0x24c   :  { %592 = vmatpush.msrb.mxu2 %v1117_v11 }
 0x24e   :  { %593 = vmatpush.msrb.mxu2 %v1122_v12 }
 0x250   :  { %594 = vmatpush.msrb.mxu2 %v1129_v13 }
 0x252   :  { %595 = vmatpush.msrb.mxu2 %v1138_v14 }
 0x253   :  { %406 = vmatmul.f32.vlgmr.msra.gmra.mxu2 %v1045_v40  ;;  %v1308_v40 = vld [vmem:[%s1412_s6] ss:$0 sm:$0xff] }
 0x254   :  { %596 = vmatpush.msrb.mxu2 %v1147_v15 }
 0x256   :  { %597 = vmatpush.msrb.mxu2 %v1157_v16 }
 0x258   :  { %598 = vmatpush.msrb.mxu2 %v1174_v17 }
 0x25a   :  { %599 = vmatpush.msrb.mxu2 %v1183_v18 }
 0x25b   :  { %409 = vmatmul.f32.gmra.mxu2 %v1052_v46 }
 0x25c   :  { %600 = vmatpush.msrb.mxu2 %v1190_v19 }
 0x25e   :  { %601 = vmatpush.msrb.mxu2 %v1198_v20 }
 0x260   :  { %602 = vmatpush.msrb.mxu2 %v1204_v21 }
 0x262   :  { %603 = vmatpush.msrb.mxu2 %v1217_v22 }
 0x263   :  { %412 = vmatmul.f32.gmra.mxu2 %v1077_v58 }
 0x264   :  { %604 = vmatpush.msrb.mxu2 %v1226_v23 }
 0x266   :  { %605 = vmatpush.msrb.mxu2 %v1231_v24 }
 0x268   :  { %606 = vmatpush.msrb.mxu2 %v1242_v26 }
 0x26a   :  { %607 = vmatpush.msrb.mxu2 %v1255_v27 }
 0x26b   :  { %415 = vmatmul.f32.gmra.mxu2 %v700_v10 }
 0x2ce   :  { %v258_v30 = vpop.f32.mrf.mxu2 }
 0x2cf   :  { %v261_v31 = vadd.f32 %v258_v30, %v112_v29  ;;  %v649_v29 = vld [vmem:[%s1413_s7 + $0x28] sm:$0xff] }
 0x2d1   :  { %701 = vtanh.f32 %v261_v31 }
 0x2d6   :  { %v407_v41 = vpop.f32.mrf.mxu2 }
 0x2d7   :  { %v702_v34 = vpop.eup %701  ;;  %v408_v42 = vadd.f32 %v1308_v40, %v407_v41 }
 0x2d8   :  { %284 = vmatmul.f32.vlgmr.msrb.gmra.mxu3 %v702_v34  ;;  %418 = vmatmul.f32.gmra.mxu2 %v702_v34 }
 0x2d9   :  { %517 = vmatpush.msrb.mxu3 %v1117_v11 }
 0x2db   :  { %518 = vmatpush.msrb.mxu3 %v1122_v12 }
 0x2dd   :  { %519 = vmatpush.msrb.mxu3 %v1129_v13 }
 0x2de   :  { %v410_v52 = vpop.f32.mrf.mxu2 }
 0x2df   :  { %520 = vmatpush.msrb.mxu3 %v1138_v14  ;;  %v411_v53 = vadd.f32 %v1308_v40, %v410_v52 }
 0x2e0   :  { %458 = vmatmul.f32.vlgmr.msra.gmra.mxu3 %v725_v33  ;;  %v78_v33 = vld [vmem:[%s1409_s0 + $0x38] sm:$0xff] }
 0x2e1   :  { %521 = vmatpush.msrb.mxu3 %v1147_v15  ;;  %119 = vmatmul.f32.gmra.mxu0 %v78_v33  ;;  %v648_v33 = vld [vmem:[%s1413_s7 + $0x20] sm:$0xff] }
 0x2e3   :  { %522 = vmatpush.msrb.mxu3 %v1157_v16 }
 0x2e5   :  { %523 = vmatpush.msrb.mxu3 %v1174_v17 }
 0x2e6   :  { %v413_v61 = vpop.f32.mrf.mxu2 }
 0x2e7   :  { %524 = vmatpush.msrb.mxu3 %v1183_v18  ;;  %v414_v62 = vadd.f32 %v1308_v40, %v413_v61 }
 0x2e9   :  { %525 = vmatpush.msrb.mxu3 %v1190_v19 }
 0x2eb   :  { %526 = vmatpush.msrb.mxu3 %v1198_v20 }
 0x2ed   :  { %527 = vmatpush.msrb.mxu3 %v1204_v21 }
 0x2ee   :  { %v416_v3 = vpop.f32.mrf.mxu2 }
 0x2ef   :  { %528 = vmatpush.msrb.mxu3 %v1217_v22  ;;  %v417_v4 = vadd.f32 %v1308_v40, %v416_v3 }
 0x2f1   :  { %529 = vmatpush.msrb.mxu3 %v1226_v23 }
 0x2f3   :  { %530 = vmatpush.msrb.mxu3 %v1231_v24 }
 0x2f5   :  { %531 = vmatpush.msrb.mxu3 %v1242_v26 }
 0x2f7   :  { %532 = vmatpush.msrb.mxu3 %v1255_v27 }
 0x2f9   :  { %617 = vmatpush.msra.mxu3 %v1117_v11 }
 0x2fb   :  { %618 = vmatpush.msra.mxu3 %v1122_v12 }
 0x2fd   :  { %619 = vmatpush.msra.mxu3 %v1129_v13 }
 0x2ff   :  { %620 = vmatpush.msra.mxu3 %v1138_v14 }
 0x301   :  { %621 = vmatpush.msra.mxu3 %v1147_v15 }
 0x303   :  { %622 = vmatpush.msra.mxu3 %v1157_v16 }
 0x305   :  { %623 = vmatpush.msra.mxu3 %v1174_v17 }
 0x307   :  { %624 = vmatpush.msra.mxu3 %v1183_v18 }
 0x309   :  { %625 = vmatpush.msra.mxu3 %v1190_v19 }
 0x30b   :  { %626 = vmatpush.msra.mxu3 %v1198_v20 }
 0x30d   :  { %627 = vmatpush.msra.mxu3 %v1204_v21 }
 0x30f   :  { %628 = vmatpush.msra.mxu3 %v1217_v22 }
 0x311   :  { %629 = vmatpush.msra.mxu3 %v1226_v23 }
 0x313   :  { %630 = vmatpush.msra.mxu3 %v1231_v24 }
 0x315   :  { %631 = vmatpush.msra.mxu3 %v1242_v26 }
 0x317   :  { %632 = vmatpush.msra.mxu3 %v1255_v27 }
 0x35b   :  { %v285_v38 = vpop.f32.mrf.mxu3  ;;  %v419_v7 = vpop.f32.mrf.mxu2 }
 0x35c   :  { %v288_v39 = vadd.f32 %v285_v38, %v115_v37  ;;  %v420_v8 = vadd.f32 %v1308_v40, %v419_v7  ;;  %v646_v37 = vld [vmem:[%s1413_s7 + $0x10] sm:$0xff]  ;;  %v645_v38 = vld [vmem:[%s1413_s7 + $0x8] sm:$0xff] }
 0x35e   :  { %703 = vtanh.f32 %v288_v39  ;;  %v120_v48 = vpop.f32.mrf.mxu0  ;;  %v644_v39 = vld [vmem:[%s1413_s7] sm:$0xff] }
 0x35f   :  { %v121_v58 = vadd.f32 %v1042_v35, %v120_v48 }
 0x363   :  { %v459_v43 = vpop.f32.mrf.mxu3 }
 0x364   :  { %v704_v44 = vpop.eup %703  ;;  %v462_v45 = vadd.f32 %v459_v43, %v408_v42 }
 0x365   :  { %311 = vmatmul.f32.vlgmr.msrb.gmra.mxu0 %v704_v44  ;;  %421 = vmatmul.f32.gmra.mxu2 %v704_v44 }
 0x366   :  { %705 = vtanh.f32 %v462_v45  ;;  %542 = vmatpush.msrb.mxu0 %v1117_v11  ;;  %v692_v45 = vld [vmem:[%s1414_s8] ss:$0 sm:$0xff] }
 0x368   :  { %543 = vmatpush.msrb.mxu0 %v1122_v12 }
 0x36a   :  { %544 = vmatpush.msrb.mxu0 %v1129_v13 }
 0x36c   :  { %v706_v46 = vpop.eup %705  ;;  %545 = vmatpush.msrb.mxu0 %v1138_v14 }
 0x36d   :  { %483 = vmatmul.f32.vlgmr.msra.gmra.mxu0 %v706_v46 }
 0x36e   :  { %546 = vmatpush.msrb.mxu0 %v1147_v15 }
 0x370   :  { %547 = vmatpush.msrb.mxu0 %v1157_v16 }
 0x372   :  { %548 = vmatpush.msrb.mxu0 %v1174_v17 }
 0x374   :  { %549 = vmatpush.msrb.mxu0 %v1183_v18 }
 0x376   :  { %550 = vmatpush.msrb.mxu0 %v1190_v19 }
 0x378   :  { %551 = vmatpush.msrb.mxu0 %v1198_v20 }
 0x37a   :  { %552 = vmatpush.msrb.mxu0 %v1204_v21 }
 0x37c   :  { %553 = vmatpush.msrb.mxu0 %v1217_v22 }
 0x37e   :  { %554 = vmatpush.msrb.mxu0 %v1226_v23 }
 0x380   :  { %555 = vmatpush.msrb.mxu0 %v1231_v24 }
 0x382   :  { %556 = vmatpush.msrb.mxu0 %v1242_v26 }
 0x384   :  { %557 = vmatpush.msrb.mxu0 %v1255_v27 }
 0x3e2   :  { %v312_v50 = vpop.f32.mrf.mxu0 }
 0x3e3   :  { %v315_v51 = vadd.f32 %v312_v50, %v118_v49 }
 0x3e5   :  { %707 = vtanh.f32 %v315_v51 }
 0x3ea   :  { %v484_v54 = vpop.f32.mrf.mxu0 }
 0x3eb   :  { %v708_v55 = vpop.eup %707  ;;  %v487_v56 = vadd.f32 %v484_v54, %v411_v53 }
 0x3ec   :  { %338 = vmatmul.f32.vlgmr.msra.gmra.mxu1 %v708_v55  ;;  %424 = vmatmul.f32.gmra.mxu2 %v708_v55 }
 0x3ed   :  { %709 = vtanh.f32 %v487_v56  ;;  %567 = vmatpush.msra.mxu1 %v1117_v11 }
 0x3ef   :  { %568 = vmatpush.msra.mxu1 %v1122_v12  ;;  %v422_v12 = vpop.f32.mrf.mxu2 }
 0x3f1   :  { %569 = vmatpush.msra.mxu1 %v1129_v13  ;;  %v423_v13 = vadd.f32 %v1308_v40, %v422_v12 }
 0x3f3   :  { %v710_v57 = vpop.eup %709  ;;  %570 = vmatpush.msra.mxu1 %v1138_v14 }
 0x3f4   :  { %508 = vmatmul.f32.vlgmr.msrb.gmra.mxu1 %v710_v57 }
 0x3f5   :  { %571 = vmatpush.msra.mxu1 %v1147_v15 }
 0x3f7   :  { %572 = vmatpush.msra.mxu1 %v1157_v16 }
 0x3f9   :  { %573 = vmatpush.msra.mxu1 %v1174_v17  ;;  %v659_v17 = vld [vmem:[%s1413_s7 + $0x78] sm:$0xff] }
 0x3fa   :  { %664 = vmatpush.msra.mxu0 %v659_v17 }
 0x3fb   :  { %574 = vmatpush.msra.mxu1 %v1183_v18  ;;  %v658_v18 = vld [vmem:[%s1413_s7 + $0x70] sm:$0xff] }
 0x3fc   :  { %665 = vmatpush.msra.mxu0 %v658_v18 }
 0x3fd   :  { %575 = vmatpush.msra.mxu1 %v1190_v19  ;;  %v657_v19 = vld [vmem:[%s1413_s7 + $0x68] sm:$0xff] }
 0x3fe   :  { %666 = vmatpush.msra.mxu0 %v657_v19 }
 0x3ff   :  { %576 = vmatpush.msra.mxu1 %v1198_v20  ;;  %v656_v20 = vld [vmem:[%s1413_s7 + $0x60] sm:$0xff] }
 0x400   :  { %667 = vmatpush.msra.mxu0 %v656_v20 }
 0x401   :  { %577 = vmatpush.msra.mxu1 %v1204_v21 }
 0x403   :  { %578 = vmatpush.msra.mxu1 %v1217_v22  ;;  %v655_v22 = vld [vmem:[%s1413_s7 + $0x58] sm:$0xff] }
 0x404   :  { %668 = vmatpush.msra.mxu0 %v655_v22 }
 0x405   :  { %579 = vmatpush.msra.mxu1 %v1226_v23  ;;  %v654_v23 = vld [vmem:[%s1413_s7 + $0x50] sm:$0xff] }
 0x406   :  { %669 = vmatpush.msra.mxu0 %v654_v23 }
 0x407   :  { %580 = vmatpush.msra.mxu1 %v1231_v24  ;;  %v653_v24 = vld [vmem:[%s1413_s7 + $0x48] sm:$0xff] }
 0x408   :  { %670 = vmatpush.msra.mxu0 %v653_v24 }
 0x409   :  { %581 = vmatpush.msra.mxu1 %v1242_v26 }
 0x40a   :  { %671 = vmatpush.msra.mxu0 %v652_v25 }
 0x40b   :  { %582 = vmatpush.msra.mxu1 %v1255_v27  ;;  %v651_v27 = vld [vmem:[%s1413_s7 + $0x38] sm:$0xff] }
 0x40c   :  { %672 = vmatpush.msra.mxu0 %v651_v27 }
 0x40e   :  { %673 = vmatpush.msra.mxu0 %v650_v28 }
 0x410   :  { %674 = vmatpush.msra.mxu0 %v649_v29 }
 0x412   :  { %675 = vmatpush.msra.mxu0 %v648_v33 }
 0x414   :  { %676 = vmatpush.msra.mxu0 %v647_v36 }
 0x416   :  { %677 = vmatpush.msra.mxu0 %v646_v37 }
 0x418   :  { %678 = vmatpush.msra.mxu0 %v645_v38 }
 0x41a   :  { %679 = vmatpush.msra.mxu0 %v644_v39 }
 0x469   :  { %v339_v59 = vpop.f32.mrf.mxu1 }
 0x46a   :  { %v342_v60 = vadd.f32 %v339_v59, %v121_v58 }
 0x46c   :  { %711 = vtanh.f32 %v342_v60 }
 0x46f   :  { %v425_v21 = vpop.f32.mrf.mxu2 }
 0x470   :  { %v426_v30 = vadd.f32 %v1308_v40, %v425_v21 }
 0x471   :  { %v509_v63 = vpop.f32.mrf.mxu1 }
 0x472   :  { %v712_v0 = vpop.eup %711  ;;  %v512_v1 = vadd.f32 %v509_v63, %v414_v62 }
 0x473   :  { %427 = vmatmul.f32.gmra.mxu2 %v712_v0 }
 0x474   :  { %713 = vtanh.f32 %v512_v1 }
 0x47a   :  { %v714_v2 = vpop.eup %713 }
 0x47b   :  { %533 = vmatmul.f32.vlgmr.msrb.gmra.mxu3 %v714_v2 }
 0x4f6   :  { %v428_v26 = vpop.f32.mrf.mxu2 }
 0x4f7   :  { %v429_v41 = vadd.f32 %v1308_v40, %v428_v26 }
 0x4fe   :  { %v534_v5 = vpop.f32.mrf.mxu3 }
 0x4ff   :  { %v537_v6 = vadd.f32 %v534_v5, %v417_v4 }
 0x501   :  { %715 = vtanh.f32 %v537_v6 }
 0x507   :  { %v716_v35 = vpop.eup %715 }
 0x508   :  { %558 = vmatmul.f32.vlgmr.msrb.gmra.mxu0 %v716_v35 }
 0x585   :  { %v559_v9 = vpop.f32.mrf.mxu0 }
 0x586   :  { %v562_v10 = vadd.f32 %v559_v9, %v420_v8 }
 0x588   :  { %717 = vtanh.f32 %v562_v10 }
 0x58e   :  { %v718_v11 = vpop.eup %717 }
 0x58f   :  { %583 = vmatmul.f32.vlgmr.msra.gmra.mxu1 %v718_v11 }
 0x60c   :  { %v584_v14 = vpop.f32.mrf.mxu1 }
 0x60d   :  { %v587_v15 = vadd.f32 %v584_v14, %v423_v13 }
 0x60f   :  { %719 = vtanh.f32 %v587_v15 }
 0x615   :  { %v720_v16 = vpop.eup %719 }
 0x616   :  { %608 = vmatmul.f32.vlgmr.msrb.gmra.mxu2 %v720_v16 }
 0x699   :  { %v609_v31 = vpop.f32.mrf.mxu2 }
 0x69a   :  { %v612_v32 = vadd.f32 %v609_v31, %v426_v30 }
 0x69c   :  { %721 = vtanh.f32 %v612_v32 }
 0x6a2   :  { %v722_v34 = vpop.eup %721 }
 0x6a3   :  { %633 = vmatmul.f32.vlgmr.msra.gmra.mxu3 %v722_v34 }
 0x726   :  { %v634_v42 = vpop.f32.mrf.mxu3 }
 0x727   :  { %v637_v43 = vadd.f32 %v634_v42, %v429_v41 }
 0x729   :  { %723 = vtanh.f32 %v637_v43 }
 0x72f   :  { %v724_v44 = vpop.eup %723 }
 0x730   :  { %680 = vmatmul.f32.vlgmr.msra.gmra.mxu0 %v724_v44 }
 0x7ad   :  { %v681_v46 = vpop.f32.mrf.mxu0 }
 0x7ae   :  { %v682_v47 = vadd.f32 %v692_v45, %v681_v46 }
 0x7b0   :  { %684 = vst [vmem:[%s1415_s9] sm:$0xff] %v682_v47 }

</bundles_post_ra>
